<compile_context>
chip_gen: v7x
topology: tpu7x:2x2x1
jax: 0.10.0
libtpu: 0.0.40
codegen_flags: <defaults>
</compile_context>

<pallas_src>
import functools

import jax
import jax.numpy as jnp
from jax.experimental import pallas as pl
from jax.experimental.pallas import tpu as pltpu


# ----------------------------- Pallas kernel ------------------------------


def _fused_lstm_fc_kernel(x_ref, *refs):
    """Fused multi-layer LSTM + Linear + quaternion L2-normalize.

    Argument layout (all VMEM-resident, single invocation, no grid):
      x_ref:                  (B, T, D)        batch_first input, read once
      per layer l:            wih (D_in, 4H), whh (H, 4H), b (1, 4H)
      fc_w_ref:               (H, C)
      fc_b_ref:               (1, C)
      o_ref (output):         (B, C)           only the final result hits HBM
    """
    num_layers = (len(refs) - 3) // 3
    layer_refs = refs[: 3 * num_layers]
    fc_w_ref, fc_b_ref, o_ref = refs[3 * num_layers:]

    B, T, _ = x_ref.shape
    H = layer_refs[1].shape[0]  # whh is (H, 4H)

    x_all = x_ref[...]  # (B, T, D) — whole sequence resident in VMEM/vregs

    # Lane mask (hoisted): tanh on lanes [2H, 3H) (gate g), sigmoid on i/f/o lanes.
    lane = jax.lax.broadcasted_iota(jnp.int32, (B, 4 * H), dimension=1)
    g_mask = (lane >= 2 * H) & (lane < 3 * H)

    # Load all weights once (hoisted out of the unrolled loops).
    wihs = [layer_refs[3 * l][...] for l in range(num_layers)]
    whhs = [layer_refs[3 * l + 1][...] for l in range(num_layers)]
    bias = [layer_refs[3 * l + 2][...] for l in range(num_layers)]

    # Hidden / cell state kept as values (vregs) across the unrolled time loop.
    hs = [jnp.zeros((B, H), jnp.float32) for _ in range(num_layers)]
    cs = [jnp.zeros((B, H), jnp.float32) for _ in range(num_layers)]

    for t in range(T):
        inp = x_all[:, t, :]  # (B, D_in) — static slice, no HBM traffic
        for l in range(num_layers):
            # PyTorch gate order: i, f, g, o
            gates = (
                jnp.dot(inp, wihs[l], preferred_element_type=jnp.float32)
                + jnp.dot(hs[l], whhs[l], preferred_element_type=jnp.float32)
                + bias[l]
            )  # (B, 4H)
            act = jnp.where(g_mask, jnp.tanh(gates), jax.nn.sigmoid(gates))
            i_g = act[:, 0 * H:1 * H]
            f_g = act[:, 1 * H:2 * H]
            g_g = act[:, 2 * H:3 * H]
            o_g = act[:, 3 * H:4 * H]
            cs[l] = f_g * cs[l] + i_g * g_g
            hs[l] = o_g * jnp.tanh(cs[l])
            inp = hs[l]

    # Final timestep of last layer -> Linear -> quaternion L2-normalize (dim=1).
    y = (
        jnp.dot(hs[-1], fc_w_ref[...], preferred_element_type=jnp.float32)
        + fc_b_ref[...]
    )  # (B, C)
    norm = jnp.sqrt(jnp.sum(y * y, axis=1, keepdims=True))
    o_ref[...] = (y * pl.reciprocal(norm)).astype(o_ref.dtype)


# ------------------------------ Wrapper -----------------------------------


@functools.partial(jax.jit, static_argnames=())
def lstm_forward(x, layer_params, fc_w, fc_b):
    """x: (B, T, input_size) batch_first.  Returns (B, num_classes), rows L2-normalized."""
    B = x.shape[0]
    C = fc_w.shape[1]

    flat_weights = []
    for (wih, whh, b) in layer_params:
        flat_weights += [wih, whh, b]

    n_inputs = 1 + len(flat_weights) + 2
    return pl.pallas_call(
        _fused_lstm_fc_kernel,
        out_shape=jax.ShapeDtypeStruct((B, C), jnp.float32),
        in_specs=[pl.BlockSpec(memory_space=pltpu.MemorySpace.VMEM)] * n_inputs,
        out_specs=pl.BlockSpec(memory_space=pltpu.MemorySpace.VMEM),
    )(x, *flat_weights, fc_w, fc_b)
    # TODO(synk): for large H the fused weights must be budgeted against 64 MiB VMEM
    # on v7x (store bf16 or stream K); trivially resident at these sizes (<60 KB).


# --------------------------- Pure-JAX reference -----------------------------


def ref_forward(x, layer_params, fc_w, fc_b):
    B = x.shape[0]
    seq = jnp.transpose(x, (1, 0, 2))
    for (wih, whh, b) in layer_params:
        H = whh.shape[0]

        def step(carry, xt):
            h, c = carry
            gates = xt @ wih + h @ whh + b
            i = jax.nn.sigmoid(gates[:, :H])
            f = jax.nn.sigmoid(gates[:, H:2 * H])
            g = jnp.tanh(gates[:, 2 * H:3 * H])
            o = jax.nn.sigmoid(gates[:, 3 * H:])
            c = f * c + i * g
            h = o * jnp.tanh(c)
            return (h, c), h

        init = (jnp.zeros((B, H), jnp.float32), jnp.zeros((B, H), jnp.float32))
        _, hs = jax.lax.scan(step, init, seq)
        seq = hs
    y = seq[-1] @ fc_w + fc_b
    return y / jnp.linalg.norm(y, axis=1, keepdims=True)


# ------------------------------ Param init ----------------------------------


def init_params(key, input_size, hidden_size, num_layers, num_classes):
    """Deterministic init mirroring PyTorch defaults: U(-1/sqrt(H), 1/sqrt(H))."""
    H = hidden_size
    bound = 1.0 / jnp.sqrt(jnp.float32(H))
    layer_params = []
    for l in range(num_layers):
        in_sz = input_size if l == 0 else hidden_size
        key, k1, k2, k3, k4 = jax.random.split(key, 5)
        wih = jax.random.uniform(k1, (in_sz, 4 * H), jnp.float32, -bound, bound)
        whh = jax.random.uniform(k2, (H, 4 * H), jnp.float32, -bound, bound)
        b_ih = jax.random.uniform(k3, (4 * H,), jnp.float32, -bound, bound)
        b_hh = jax.random.uniform(k4, (4 * H,), jnp.float32, -bound, bound)
        b = (b_ih + b_hh).reshape(1, 4 * H)
        layer_params.append((wih, whh, b))
    fc_bound = 1.0 / jnp.sqrt(jnp.float32(H))
    key, k1, k2 = jax.random.split(key, 3)
    fc_w = jax.random.uniform(k1, (H, num_classes), jnp.float32, -fc_bound, fc_bound)
    fc_b = jax.random.uniform(k2, (1, num_classes), jnp.float32, -fc_bound, fc_bound)
    return tuple(layer_params), fc_w, fc_b


# --------------------------------- Main --------------------------------------


if __name__ == "__main__":
    batch, seq_len, input_size = 2, 8, 16
    hidden_size, num_layers, num_classes = 32, 2, 4  # quaternion output

    key = jax.random.PRNGKey(0)
    key, xk = jax.random.split(key)
    x = jax.random.normal(xk, (batch, seq_len, input_size), jnp.float32)

    layer_params, fc_w, fc_b = init_params(
        key, input_size, hidden_size, num_layers, num_classes
    )

    out = lstm_forward(x, layer_params, fc_w, fc_b)
    out = jax.block_until_ready(out)

    ref = ref_forward(x, layer_params, fc_w, fc_b)
    assert out.shape == (batch, num_classes)
    assert jnp.max(jnp.abs(out - ref)) < 1e-5, "Pallas result mismatch vs reference"

    print("KERNEL_OK")
</pallas_src>

<mosaic_0001>
module attributes {stable_mosaic.version = 11 : i64} {
  func.func @_fused_lstm_fc_kernel(%arg0: memref<2x8x16xf32, #tpu.memory_space<vmem>>, %arg1: memref<16x128xf32, #tpu.memory_space<vmem>>, %arg2: memref<32x128xf32, #tpu.memory_space<vmem>>, %arg3: memref<1x128xf32, #tpu.memory_space<vmem>>, %arg4: memref<32x128xf32, #tpu.memory_space<vmem>>, %arg5: memref<32x128xf32, #tpu.memory_space<vmem>>, %arg6: memref<1x128xf32, #tpu.memory_space<vmem>>, %arg7: memref<32x4xf32, #tpu.memory_space<vmem>>, %arg8: memref<1x4xf32, #tpu.memory_space<vmem>>, %arg9: memref<2x4xf32, #tpu.memory_space<vmem>>) attributes {dimension_semantics = [], scalar_prefetch = 0 : i64, scratch_operands = 0 : i64, tpu.core_type = #tpu.core_type<tc>} {
    %c0 = arith.constant 0 : index
    %c0_0 = arith.constant 0 : index
    %c0_1 = arith.constant 0 : index
    %0 = vector.load %arg0[%c0, %c0_0, %c0_1] : memref<2x8x16xf32, #tpu.memory_space<vmem>>, vector<2x8x16xf32>
    %1 = tpu.iota {dimensions = array<i32: 1>} : vector<2x128xi32>
    %c64_i32 = arith.constant 64 : i32
    %2 = vector.broadcast %c64_i32 : i32 to vector<2x128xi32>
    %3 = arith.cmpi sge, %1, %2 : vector<2x128xi32>
    %c96_i32 = arith.constant 96 : i32
    %4 = vector.broadcast %c96_i32 : i32 to vector<2x128xi32>
    %5 = arith.cmpi slt, %1, %4 : vector<2x128xi32>
    %6 = arith.andi %3, %5 : vector<2x128xi1>
    %c0_2 = arith.constant 0 : index
    %c0_3 = arith.constant 0 : index
    %7 = vector.load %arg1[%c0_2, %c0_3] : memref<16x128xf32, #tpu.memory_space<vmem>>, vector<16x128xf32>
    %c0_4 = arith.constant 0 : index
    %c0_5 = arith.constant 0 : index
    %8 = vector.load %arg4[%c0_4, %c0_5] : memref<32x128xf32, #tpu.memory_space<vmem>>, vector<32x128xf32>
    %c0_6 = arith.constant 0 : index
    %c0_7 = arith.constant 0 : index
    %9 = vector.load %arg2[%c0_6, %c0_7] : memref<32x128xf32, #tpu.memory_space<vmem>>, vector<32x128xf32>
    %c0_8 = arith.constant 0 : index
    %c0_9 = arith.constant 0 : index
    %10 = vector.load %arg5[%c0_8, %c0_9] : memref<32x128xf32, #tpu.memory_space<vmem>>, vector<32x128xf32>
    %c0_10 = arith.constant 0 : index
    %c0_11 = arith.constant 0 : index
    %11 = vector.load %arg3[%c0_10, %c0_11] : memref<1x128xf32, #tpu.memory_space<vmem>>, vector<1x128xf32>
    %c0_12 = arith.constant 0 : index
    %c0_13 = arith.constant 0 : index
    %12 = vector.load %arg6[%c0_12, %c0_13] : memref<1x128xf32, #tpu.memory_space<vmem>>, vector<1x128xf32>
    %cst = arith.constant 0.000000e+00 : f32
    %13 = vector.broadcast %cst : f32 to vector<2x32xf32>
    %cst_14 = arith.constant 0.000000e+00 : f32
    %14 = vector.broadcast %cst_14 : f32 to vector<2x32xf32>
    %cst_15 = arith.constant 0.000000e+00 : f32
    %15 = vector.broadcast %cst_15 : f32 to vector<2x32xf32>
    %cst_16 = arith.constant 0.000000e+00 : f32
    %16 = vector.broadcast %cst_16 : f32 to vector<2x32xf32>
    %17 = vector.extract_strided_slice %0 {offsets = [0, 0, 0], sizes = [2, 1, 16], strides = [1, 1, 1]} : vector<2x8x16xf32> to vector<2x1x16xf32>
    %18 = vector.shape_cast %17 : vector<2x1x16xf32> to vector<2x16xf32>
    %cst_17 = arith.constant dense<0.000000e+00> : vector<2x128xf32>
    %19 = tpu.matmul %18, %7, %cst_17 {dimension_numbers = #tpu.dot_dimension_numbers<[1], [0], [0], [1], [0, 0, 1, 1], [], []>} : vector<2x16xf32>, vector<16x128xf32>, vector<2x128xf32> -> vector<2x128xf32>
    %cst_18 = arith.constant dense<0.000000e+00> : vector<2x128xf32>
    %20 = tpu.matmul %13, %9, %cst_18 {dimension_numbers = #tpu.dot_dimension_numbers<[1], [0], [0], [1], [0, 0, 1, 1], [], []>} : vector<2x32xf32>, vector<32x128xf32>, vector<2x128xf32> -> vector<2x128xf32>
    %21 = arith.addf %19, %20 : vector<2x128xf32>
    %22 = vector.broadcast %11 : vector<1x128xf32> to vector<2x128xf32>
    %23 = arith.addf %21, %22 : vector<2x128xf32>
    %24 = math.tanh %23 : vector<2x128xf32>
    %25 = arith.negf %23 : vector<2x128xf32>
    %26 = math.exp %25 : vector<2x128xf32>
    %cst_19 = arith.constant 1.000000e+00 : f32
    %27 = vector.broadcast %cst_19 : f32 to vector<2x128xf32>
    %28 = arith.addf %27, %26 : vector<2x128xf32>
    %29 = arith.divf %27, %28 : vector<2x128xf32>
    %30 = arith.select %6, %24, %29 : vector<2x128xi1>, vector<2x128xf32>
    %31 = vector.extract_strided_slice %30 {offsets = [0, 0], sizes = [2, 32], strides = [1, 1]} : vector<2x128xf32> to vector<2x32xf32>
    %32 = vector.extract_strided_slice %30 {offsets = [0, 32], sizes = [2, 32], strides = [1, 1]} : vector<2x128xf32> to vector<2x32xf32>
    %33 = vector.extract_strided_slice %30 {offsets = [0, 64], sizes = [2, 32], strides = [1, 1]} : vector<2x128xf32> to vector<2x32xf32>
    %34 = vector.extract_strided_slice %30 {offsets = [0, 96], sizes = [2, 32], strides = [1, 1]} : vector<2x128xf32> to vector<2x32xf32>
    %35 = arith.mulf %32, %15 : vector<2x32xf32>
    %36 = arith.mulf %31, %33 : vector<2x32xf32>
    %37 = arith.addf %35, %36 : vector<2x32xf32>
    %38 = math.tanh %37 : vector<2x32xf32>
    %39 = arith.mulf %34, %38 : vector<2x32xf32>
    %cst_20 = arith.constant dense<0.000000e+00> : vector<2x128xf32>
    %40 = tpu.matmul %39, %8, %cst_20 {dimension_numbers = #tpu.dot_dimension_numbers<[1], [0], [0], [1], [0, 0, 1, 1], [], []>} : vector<2x32xf32>, vector<32x128xf32>, vector<2x128xf32> -> vector<2x128xf32>
    %cst_21 = arith.constant dense<0.000000e+00> : vector<2x128xf32>
    %41 = tpu.matmul %14, %10, %cst_21 {dimension_numbers = #tpu.dot_dimension_numbers<[1], [0], [0], [1], [0, 0, 1, 1], [], []>} : vector<2x32xf32>, vector<32x128xf32>, vector<2x128xf32> -> vector<2x128xf32>
    %42 = arith.addf %40, %41 : vector<2x128xf32>
    %43 = vector.broadcast %12 : vector<1x128xf32> to vector<2x128xf32>
    %44 = arith.addf %42, %43 : vector<2x128xf32>
    %45 = math.tanh %44 : vector<2x128xf32>
    %46 = arith.negf %44 : vector<2x128xf32>
    %47 = math.exp %46 : vector<2x128xf32>
    %cst_22 = arith.constant 1.000000e+00 : f32
    %48 = vector.broadcast %cst_22 : f32 to vector<2x128xf32>
    %49 = arith.addf %48, %47 : vector<2x128xf32>
    %50 = arith.divf %48, %49 : vector<2x128xf32>
    %51 = arith.select %6, %45, %50 : vector<2x128xi1>, vector<2x128xf32>
    %52 = vector.extract_strided_slice %51 {offsets = [0, 0], sizes = [2, 32], strides = [1, 1]} : vector<2x128xf32> to vector<2x32xf32>
    %53 = vector.extract_strided_slice %51 {offsets = [0, 32], sizes = [2, 32], strides = [1, 1]} : vector<2x128xf32> to vector<2x32xf32>
    %54 = vector.extract_strided_slice %51 {offsets = [0, 64], sizes = [2, 32], strides = [1, 1]} : vector<2x128xf32> to vector<2x32xf32>
    %55 = vector.extract_strided_slice %51 {offsets = [0, 96], sizes = [2, 32], strides = [1, 1]} : vector<2x128xf32> to vector<2x32xf32>
    %56 = arith.mulf %53, %16 : vector<2x32xf32>
    %57 = arith.mulf %52, %54 : vector<2x32xf32>
    %58 = arith.addf %56, %57 : vector<2x32xf32>
    %59 = math.tanh %58 : vector<2x32xf32>
    %60 = arith.mulf %55, %59 : vector<2x32xf32>
    %61 = vector.extract_strided_slice %0 {offsets = [0, 1, 0], sizes = [2, 1, 16], strides = [1, 1, 1]} : vector<2x8x16xf32> to vector<2x1x16xf32>
    %62 = vector.shape_cast %61 : vector<2x1x16xf32> to vector<2x16xf32>
    %cst_23 = arith.constant dense<0.000000e+00> : vector<2x128xf32>
    %63 = tpu.matmul %62, %7, %cst_23 {dimension_numbers = #tpu.dot_dimension_numbers<[1], [0], [0], [1], [0, 0, 1, 1], [], []>} : vector<2x16xf32>, vector<16x128xf32>, vector<2x128xf32> -> vector<2x128xf32>
    %cst_24 = arith.constant dense<0.000000e+00> : vector<2x128xf32>
    %64 = tpu.matmul %39, %9, %cst_24 {dimension_numbers = #tpu.dot_dimension_numbers<[1], [0], [0], [1], [0, 0, 1, 1], [], []>} : vector<2x32xf32>, vector<32x128xf32>, vector<2x128xf32> -> vector<2x128xf32>
    %65 = arith.addf %63, %64 : vector<2x128xf32>
    %66 = vector.broadcast %11 : vector<1x128xf32> to vector<2x128xf32>
    %67 = arith.addf %65, %66 : vector<2x128xf32>
    %68 = math.tanh %67 : vector<2x128xf32>
    %69 = arith.negf %67 : vector<2x128xf32>
    %70 = math.exp %69 : vector<2x128xf32>
    %cst_25 = arith.constant 1.000000e+00 : f32
    %71 = vector.broadcast %cst_25 : f32 to vector<2x128xf32>
    %72 = arith.addf %71, %70 : vector<2x128xf32>
    %73 = arith.divf %71, %72 : vector<2x128xf32>
    %74 = arith.select %6, %68, %73 : vector<2x128xi1>, vector<2x128xf32>
    %75 = vector.extract_strided_slice %74 {offsets = [0, 0], sizes = [2, 32], strides = [1, 1]} : vector<2x128xf32> to vector<2x32xf32>
    %76 = vector.extract_strided_slice %74 {offsets = [0, 32], sizes = [2, 32], strides = [1, 1]} : vector<2x128xf32> to vector<2x32xf32>
    %77 = vector.extract_strided_slice %74 {offsets = [0, 64], sizes = [2, 32], strides = [1, 1]} : vector<2x128xf32> to vector<2x32xf32>
    %78 = vector.extract_strided_slice %74 {offsets = [0, 96], sizes = [2, 32], strides = [1, 1]} : vector<2x128xf32> to vector<2x32xf32>
    %79 = arith.mulf %76, %37 : vector<2x32xf32>
    %80 = arith.mulf %75, %77 : vector<2x32xf32>
    %81 = arith.addf %79, %80 : vector<2x32xf32>
    %82 = math.tanh %81 : vector<2x32xf32>
    %83 = arith.mulf %78, %82 : vector<2x32xf32>
    %cst_26 = arith.constant dense<0.000000e+00> : vector<2x128xf32>
    %84 = tpu.matmul %83, %8, %cst_26 {dimension_numbers = #tpu.dot_dimension_numbers<[1], [0], [0], [1], [0, 0, 1, 1], [], []>} : vector<2x32xf32>, vector<32x128xf32>, vector<2x128xf32> -> vector<2x128xf32>
    %cst_27 = arith.constant dense<0.000000e+00> : vector<2x128xf32>
    %85 = tpu.matmul %60, %10, %cst_27 {dimension_numbers = #tpu.dot_dimension_numbers<[1], [0], [0], [1], [0, 0, 1, 1], [], []>} : vector<2x32xf32>, vector<32x128xf32>, vector<2x128xf32> -> vector<2x128xf32>
    %86 = arith.addf %84, %85 : vector<2x128xf32>
    %87 = vector.broadcast %12 : vector<1x128xf32> to vector<2x128xf32>
    %88 = arith.addf %86, %87 : vector<2x128xf32>
    %89 = math.tanh %88 : vector<2x128xf32>
    %90 = arith.negf %88 : vector<2x128xf32>
    %91 = math.exp %90 : vector<2x128xf32>
    %cst_28 = arith.constant 1.000000e+00 : f32
    %92 = vector.broadcast %cst_28 : f32 to vector<2x128xf32>
    %93 = arith.addf %92, %91 : vector<2x128xf32>
    %94 = arith.divf %92, %93 : vector<2x128xf32>
    %95 = arith.select %6, %89, %94 : vector<2x128xi1>, vector<2x128xf32>
    %96 = vector.extract_strided_slice %95 {offsets = [0, 0], sizes = [2, 32], strides = [1, 1]} : vector<2x128xf32> to vector<2x32xf32>
    %97 = vector.extract_strided_slice %95 {offsets = [0, 32], sizes = [2, 32], strides = [1, 1]} : vector<2x128xf32> to vector<2x32xf32>
    %98 = vector.extract_strided_slice %95 {offsets = [0, 64], sizes = [2, 32], strides = [1, 1]} : vector<2x128xf32> to vector<2x32xf32>
    %99 = vector.extract_strided_slice %95 {offsets = [0, 96], sizes = [2, 32], strides = [1, 1]} : vector<2x128xf32> to vector<2x32xf32>
    %100 = arith.mulf %97, %58 : vector<2x32xf32>
    %101 = arith.mulf %96, %98 : vector<2x32xf32>
    %102 = arith.addf %100, %101 : vector<2x32xf32>
    %103 = math.tanh %102 : vector<2x32xf32>
    %104 = arith.mulf %99, %103 : vector<2x32xf32>
    %105 = vector.extract_strided_slice %0 {offsets = [0, 2, 0], sizes = [2, 1, 16], strides = [1, 1, 1]} : vector<2x8x16xf32> to vector<2x1x16xf32>
    %106 = vector.shape_cast %105 : vector<2x1x16xf32> to vector<2x16xf32>
    %cst_29 = arith.constant dense<0.000000e+00> : vector<2x128xf32>
    %107 = tpu.matmul %106, %7, %cst_29 {dimension_numbers = #tpu.dot_dimension_numbers<[1], [0], [0], [1], [0, 0, 1, 1], [], []>} : vector<2x16xf32>, vector<16x128xf32>, vector<2x128xf32> -> vector<2x128xf32>
    %cst_30 = arith.constant dense<0.000000e+00> : vector<2x128xf32>
    %108 = tpu.matmul %83, %9, %cst_30 {dimension_numbers = #tpu.dot_dimension_numbers<[1], [0], [0], [1], [0, 0, 1, 1], [], []>} : vector<2x32xf32>, vector<32x128xf32>, vector<2x128xf32> -> vector<2x128xf32>
    %109 = arith.addf %107, %108 : vector<2x128xf32>
    %110 = vector.broadcast %11 : vector<1x128xf32> to vector<2x128xf32>
    %111 = arith.addf %109, %110 : vector<2x128xf32>
    %112 = math.tanh %111 : vector<2x128xf32>
    %113 = arith.negf %111 : vector<2x128xf32>
    %114 = math.exp %113 : vector<2x128xf32>
    %cst_31 = arith.constant 1.000000e+00 : f32
    %115 = vector.broadcast %cst_31 : f32 to vector<2x128xf32>
    %116 = arith.addf %115, %114 : vector<2x128xf32>
    %117 = arith.divf %115, %116 : vector<2x128xf32>
    %118 = arith.select %6, %112, %117 : vector<2x128xi1>, vector<2x128xf32>
    %119 = vector.extract_strided_slice %118 {offsets = [0, 0], sizes = [2, 32], strides = [1, 1]} : vector<2x128xf32> to vector<2x32xf32>
    %120 = vector.extract_strided_slice %118 {offsets = [0, 32], sizes = [2, 32], strides = [1, 1]} : vector<2x128xf32> to vector<2x32xf32>
    %121 = vector.extract_strided_slice %118 {offsets = [0, 64], sizes = [2, 32], strides = [1, 1]} : vector<2x128xf32> to vector<2x32xf32>
    %122 = vector.extract_strided_slice %118 {offsets = [0, 96], sizes = [2, 32], strides = [1, 1]} : vector<2x128xf32> to vector<2x32xf32>
    %123 = arith.mulf %120, %81 : vector<2x32xf32>
    %124 = arith.mulf %119, %121 : vector<2x32xf32>
    %125 = arith.addf %123, %124 : vector<2x32xf32>
    %126 = math.tanh %125 : vector<2x32xf32>
    %127 = arith.mulf %122, %126 : vector<2x32xf32>
    %cst_32 = arith.constant dense<0.000000e+00> : vector<2x128xf32>
    %128 = tpu.matmul %127, %8, %cst_32 {dimension_numbers = #tpu.dot_dimension_numbers<[1], [0], [0], [1], [0, 0, 1, 1], [], []>} : vector<2x32xf32>, vector<32x128xf32>, vector<2x128xf32> -> vector<2x128xf32>
    %cst_33 = arith.constant dense<0.000000e+00> : vector<2x128xf32>
    %129 = tpu.matmul %104, %10, %cst_33 {dimension_numbers = #tpu.dot_dimension_numbers<[1], [0], [0], [1], [0, 0, 1, 1], [], []>} : vector<2x32xf32>, vector<32x128xf32>, vector<2x128xf32> -> vector<2x128xf32>
    %130 = arith.addf %128, %129 : vector<2x128xf32>
    %131 = vector.broadcast %12 : vector<1x128xf32> to vector<2x128xf32>
    %132 = arith.addf %130, %131 : vector<2x128xf32>
    %133 = math.tanh %132 : vector<2x128xf32>
    %134 = arith.negf %132 : vector<2x128xf32>
    %135 = math.exp %134 : vector<2x128xf32>
    %cst_34 = arith.constant 1.000000e+00 : f32
    %136 = vector.broadcast %cst_34 : f32 to vector<2x128xf32>
    %137 = arith.addf %136, %135 : vector<2x128xf32>
    %138 = arith.divf %136, %137 : vector<2x128xf32>
    %139 = arith.select %6, %133, %138 : vector<2x128xi1>, vector<2x128xf32>
    %140 = vector.extract_strided_slice %139 {offsets = [0, 0], sizes = [2, 32], strides = [1, 1]} : vector<2x128xf32> to vector<2x32xf32>
    %141 = vector.extract_strided_slice %139 {offsets = [0, 32], sizes = [2, 32], strides = [1, 1]} : vector<2x128xf32> to vector<2x32xf32>
    %142 = vector.extract_strided_slice %139 {offsets = [0, 64], sizes = [2, 32], strides = [1, 1]} : vector<2x128xf32> to vector<2x32xf32>
    %143 = vector.extract_strided_slice %139 {offsets = [0, 96], sizes = [2, 32], strides = [1, 1]} : vector<2x128xf32> to vector<2x32xf32>
    %144 = arith.mulf %141, %102 : vector<2x32xf32>
    %145 = arith.mulf %140, %142 : vector<2x32xf32>
    %146 = arith.addf %144, %145 : vector<2x32xf32>
    %147 = math.tanh %146 : vector<2x32xf32>
    %148 = arith.mulf %143, %147 : vector<2x32xf32>
    %149 = vector.extract_strided_slice %0 {offsets = [0, 3, 0], sizes = [2, 1, 16], strides = [1, 1, 1]} : vector<2x8x16xf32> to vector<2x1x16xf32>
    %150 = vector.shape_cast %149 : vector<2x1x16xf32> to vector<2x16xf32>
    %cst_35 = arith.constant dense<0.000000e+00> : vector<2x128xf32>
    %151 = tpu.matmul %150, %7, %cst_35 {dimension_numbers = #tpu.dot_dimension_numbers<[1], [0], [0], [1], [0, 0, 1, 1], [], []>} : vector<2x16xf32>, vector<16x128xf32>, vector<2x128xf32> -> vector<2x128xf32>
    %cst_36 = arith.constant dense<0.000000e+00> : vector<2x128xf32>
    %152 = tpu.matmul %127, %9, %cst_36 {dimension_numbers = #tpu.dot_dimension_numbers<[1], [0], [0], [1], [0, 0, 1, 1], [], []>} : vector<2x32xf32>, vector<32x128xf32>, vector<2x128xf32> -> vector<2x128xf32>
    %153 = arith.addf %151, %152 : vector<2x128xf32>
    %154 = vector.broadcast %11 : vector<1x128xf32> to vector<2x128xf32>
    %155 = arith.addf %153, %154 : vector<2x128xf32>
    %156 = math.tanh %155 : vector<2x128xf32>
    %157 = arith.negf %155 : vector<2x128xf32>
    %158 = math.exp %157 : vector<2x128xf32>
    %cst_37 = arith.constant 1.000000e+00 : f32
    %159 = vector.broadcast %cst_37 : f32 to vector<2x128xf32>
    %160 = arith.addf %159, %158 : vector<2x128xf32>
    %161 = arith.divf %159, %160 : vector<2x128xf32>
    %162 = arith.select %6, %156, %161 : vector<2x128xi1>, vector<2x128xf32>
    %163 = vector.extract_strided_slice %162 {offsets = [0, 0], sizes = [2, 32], strides = [1, 1]} : vector<2x128xf32> to vector<2x32xf32>
    %164 = vector.extract_strided_slice %162 {offsets = [0, 32], sizes = [2, 32], strides = [1, 1]} : vector<2x128xf32> to vector<2x32xf32>
    %165 = vector.extract_strided_slice %162 {offsets = [0, 64], sizes = [2, 32], strides = [1, 1]} : vector<2x128xf32> to vector<2x32xf32>
    %166 = vector.extract_strided_slice %162 {offsets = [0, 96], sizes = [2, 32], strides = [1, 1]} : vector<2x128xf32> to vector<2x32xf32>
    %167 = arith.mulf %164, %125 : vector<2x32xf32>
    %168 = arith.mulf %163, %165 : vector<2x32xf32>
    %169 = arith.addf %167, %168 : vector<2x32xf32>
    %170 = math.tanh %169 : vector<2x32xf32>
    %171 = arith.mulf %166, %170 : vector<2x32xf32>
    %cst_38 = arith.constant dense<0.000000e+00> : vector<2x128xf32>
    %172 = tpu.matmul %171, %8, %cst_38 {dimension_numbers = #tpu.dot_dimension_numbers<[1], [0], [0], [1], [0, 0, 1, 1], [], []>} : vector<2x32xf32>, vector<32x128xf32>, vector<2x128xf32> -> vector<2x128xf32>
    %cst_39 = arith.constant dense<0.000000e+00> : vector<2x128xf32>
    %173 = tpu.matmul %148, %10, %cst_39 {dimension_numbers = #tpu.dot_dimension_numbers<[1], [0], [0], [1], [0, 0, 1, 1], [], []>} : vector<2x32xf32>, vector<32x128xf32>, vector<2x128xf32> -> vector<2x128xf32>
    %174 = arith.addf %172, %173 : vector<2x128xf32>
    %175 = vector.broadcast %12 : vector<1x128xf32> to vector<2x128xf32>
    %176 = arith.addf %174, %175 : vector<2x128xf32>
    %177 = math.tanh %176 : vector<2x128xf32>
    %178 = arith.negf %176 : vector<2x128xf32>
    %179 = math.exp %178 : vector<2x128xf32>
    %cst_40 = arith.constant 1.000000e+00 : f32
    %180 = vector.broadcast %cst_40 : f32 to vector<2x128xf32>
    %181 = arith.addf %180, %179 : vector<2x128xf32>
    %182 = arith.divf %180, %181 : vector<2x128xf32>
    %183 = arith.select %6, %177, %182 : vector<2x128xi1>, vector<2x128xf32>
    %184 = vector.extract_strided_slice %183 {offsets = [0, 0], sizes = [2, 32], strides = [1, 1]} : vector<2x128xf32> to vector<2x32xf32>
    %185 = vector.extract_strided_slice %183 {offsets = [0, 32], sizes = [2, 32], strides = [1, 1]} : vector<2x128xf32> to vector<2x32xf32>
    %186 = vector.extract_strided_slice %183 {offsets = [0, 64], sizes = [2, 32], strides = [1, 1]} : vector<2x128xf32> to vector<2x32xf32>
    %187 = vector.extract_strided_slice %183 {offsets = [0, 96], sizes = [2, 32], strides = [1, 1]} : vector<2x128xf32> to vector<2x32xf32>
    %188 = arith.mulf %185, %146 : vector<2x32xf32>
    %189 = arith.mulf %184, %186 : vector<2x32xf32>
    %190 = arith.addf %188, %189 : vector<2x32xf32>
    %191 = math.tanh %190 : vector<2x32xf32>
    %192 = arith.mulf %187, %191 : vector<2x32xf32>
    %193 = vector.extract_strided_slice %0 {offsets = [0, 4, 0], sizes = [2, 1, 16], strides = [1, 1, 1]} : vector<2x8x16xf32> to vector<2x1x16xf32>
    %194 = vector.shape_cast %193 : vector<2x1x16xf32> to vector<2x16xf32>
    %cst_41 = arith.constant dense<0.000000e+00> : vector<2x128xf32>
    %195 = tpu.matmul %194, %7, %cst_41 {dimension_numbers = #tpu.dot_dimension_numbers<[1], [0], [0], [1], [0, 0, 1, 1], [], []>} : vector<2x16xf32>, vector<16x128xf32>, vector<2x128xf32> -> vector<2x128xf32>
    %cst_42 = arith.constant dense<0.000000e+00> : vector<2x128xf32>
    %196 = tpu.matmul %171, %9, %cst_42 {dimension_numbers = #tpu.dot_dimension_numbers<[1], [0], [0], [1], [0, 0, 1, 1], [], []>} : vector<2x32xf32>, vector<32x128xf32>, vector<2x128xf32> -> vector<2x128xf32>
    %197 = arith.addf %195, %196 : vector<2x128xf32>
    %198 = vector.broadcast %11 : vector<1x128xf32> to vector<2x128xf32>
    %199 = arith.addf %197, %198 : vector<2x128xf32>
    %200 = math.tanh %199 : vector<2x128xf32>
    %201 = arith.negf %199 : vector<2x128xf32>
    %202 = math.exp %201 : vector<2x128xf32>
    %cst_43 = arith.constant 1.000000e+00 : f32
    %203 = vector.broadcast %cst_43 : f32 to vector<2x128xf32>
    %204 = arith.addf %203, %202 : vector<2x128xf32>
    %205 = arith.divf %203, %204 : vector<2x128xf32>
    %206 = arith.select %6, %200, %205 : vector<2x128xi1>, vector<2x128xf32>
    %207 = vector.extract_strided_slice %206 {offsets = [0, 0], sizes = [2, 32], strides = [1, 1]} : vector<2x128xf32> to vector<2x32xf32>
    %208 = vector.extract_strided_slice %206 {offsets = [0, 32], sizes = [2, 32], strides = [1, 1]} : vector<2x128xf32> to vector<2x32xf32>
    %209 = vector.extract_strided_slice %206 {offsets = [0, 64], sizes = [2, 32], strides = [1, 1]} : vector<2x128xf32> to vector<2x32xf32>
    %210 = vector.extract_strided_slice %206 {offsets = [0, 96], sizes = [2, 32], strides = [1, 1]} : vector<2x128xf32> to vector<2x32xf32>
    %211 = arith.mulf %208, %169 : vector<2x32xf32>
    %212 = arith.mulf %207, %209 : vector<2x32xf32>
    %213 = arith.addf %211, %212 : vector<2x32xf32>
    %214 = math.tanh %213 : vector<2x32xf32>
    %215 = arith.mulf %210, %214 : vector<2x32xf32>
    %cst_44 = arith.constant dense<0.000000e+00> : vector<2x128xf32>
    %216 = tpu.matmul %215, %8, %cst_44 {dimension_numbers = #tpu.dot_dimension_numbers<[1], [0], [0], [1], [0, 0, 1, 1], [], []>} : vector<2x32xf32>, vector<32x128xf32>, vector<2x128xf32> -> vector<2x128xf32>
    %cst_45 = arith.constant dense<0.000000e+00> : vector<2x128xf32>
    %217 = tpu.matmul %192, %10, %cst_45 {dimension_numbers = #tpu.dot_dimension_numbers<[1], [0], [0], [1], [0, 0, 1, 1], [], []>} : vector<2x32xf32>, vector<32x128xf32>, vector<2x128xf32> -> vector<2x128xf32>
    %218 = arith.addf %216, %217 : vector<2x128xf32>
    %219 = vector.broadcast %12 : vector<1x128xf32> to vector<2x128xf32>
    %220 = arith.addf %218, %219 : vector<2x128xf32>
    %221 = math.tanh %220 : vector<2x128xf32>
    %222 = arith.negf %220 : vector<2x128xf32>
    %223 = math.exp %222 : vector<2x128xf32>
    %cst_46 = arith.constant 1.000000e+00 : f32
    %224 = vector.broadcast %cst_46 : f32 to vector<2x128xf32>
    %225 = arith.addf %224, %223 : vector<2x128xf32>
    %226 = arith.divf %224, %225 : vector<2x128xf32>
    %227 = arith.select %6, %221, %226 : vector<2x128xi1>, vector<2x128xf32>
    %228 = vector.extract_strided_slice %227 {offsets = [0, 0], sizes = [2, 32], strides = [1, 1]} : vector<2x128xf32> to vector<2x32xf32>
    %229 = vector.extract_strided_slice %227 {offsets = [0, 32], sizes = [2, 32], strides = [1, 1]} : vector<2x128xf32> to vector<2x32xf32>
    %230 = vector.extract_strided_slice %227 {offsets = [0, 64], sizes = [2, 32], strides = [1, 1]} : vector<2x128xf32> to vector<2x32xf32>
    %231 = vector.extract_strided_slice %227 {offsets = [0, 96], sizes = [2, 32], strides = [1, 1]} : vector<2x128xf32> to vector<2x32xf32>
    %232 = arith.mulf %229, %190 : vector<2x32xf32>
    %233 = arith.mulf %228, %230 : vector<2x32xf32>
    %234 = arith.addf %232, %233 : vector<2x32xf32>
    %235 = math.tanh %234 : vector<2x32xf32>
    %236 = arith.mulf %231, %235 : vector<2x32xf32>
    %237 = vector.extract_strided_slice %0 {offsets = [0, 5, 0], sizes = [2, 1, 16], strides = [1, 1, 1]} : vector<2x8x16xf32> to vector<2x1x16xf32>
    %238 = vector.shape_cast %237 : vector<2x1x16xf32> to vector<2x16xf32>
    %cst_47 = arith.constant dense<0.000000e+00> : vector<2x128xf32>
    %239 = tpu.matmul %238, %7, %cst_47 {dimension_numbers = #tpu.dot_dimension_numbers<[1], [0], [0], [1], [0, 0, 1, 1], [], []>} : vector<2x16xf32>, vector<16x128xf32>, vector<2x128xf32> -> vector<2x128xf32>
    %cst_48 = arith.constant dense<0.000000e+00> : vector<2x128xf32>
    %240 = tpu.matmul %215, %9, %cst_48 {dimension_numbers = #tpu.dot_dimension_numbers<[1], [0], [0], [1], [0, 0, 1, 1], [], []>} : vector<2x32xf32>, vector<32x128xf32>, vector<2x128xf32> -> vector<2x128xf32>
    %241 = arith.addf %239, %240 : vector<2x128xf32>
    %242 = vector.broadcast %11 : vector<1x128xf32> to vector<2x128xf32>
    %243 = arith.addf %241, %242 : vector<2x128xf32>
    %244 = math.tanh %243 : vector<2x128xf32>
    %245 = arith.negf %243 : vector<2x128xf32>
    %246 = math.exp %245 : vector<2x128xf32>
    %cst_49 = arith.constant 1.000000e+00 : f32
    %247 = vector.broadcast %cst_49 : f32 to vector<2x128xf32>
    %248 = arith.addf %247, %246 : vector<2x128xf32>
    %249 = arith.divf %247, %248 : vector<2x128xf32>
    %250 = arith.select %6, %244, %249 : vector<2x128xi1>, vector<2x128xf32>
    %251 = vector.extract_strided_slice %250 {offsets = [0, 0], sizes = [2, 32], strides = [1, 1]} : vector<2x128xf32> to vector<2x32xf32>
    %252 = vector.extract_strided_slice %250 {offsets = [0, 32], sizes = [2, 32], strides = [1, 1]} : vector<2x128xf32> to vector<2x32xf32>
    %253 = vector.extract_strided_slice %250 {offsets = [0, 64], sizes = [2, 32], strides = [1, 1]} : vector<2x128xf32> to vector<2x32xf32>
    %254 = vector.extract_strided_slice %250 {offsets = [0, 96], sizes = [2, 32], strides = [1, 1]} : vector<2x128xf32> to vector<2x32xf32>
    %255 = arith.mulf %252, %213 : vector<2x32xf32>
    %256 = arith.mulf %251, %253 : vector<2x32xf32>
    %257 = arith.addf %255, %256 : vector<2x32xf32>
    %258 = math.tanh %257 : vector<2x32xf32>
    %259 = arith.mulf %254, %258 : vector<2x32xf32>
    %cst_50 = arith.constant dense<0.000000e+00> : vector<2x128xf32>
    %260 = tpu.matmul %259, %8, %cst_50 {dimension_numbers = #tpu.dot_dimension_numbers<[1], [0], [0], [1], [0, 0, 1, 1], [], []>} : vector<2x32xf32>, vector<32x128xf32>, vector<2x128xf32> -> vector<2x128xf32>
    %cst_51 = arith.constant dense<0.000000e+00> : vector<2x128xf32>
    %261 = tpu.matmul %236, %10, %cst_51 {dimension_numbers = #tpu.dot_dimension_numbers<[1], [0], [0], [1], [0, 0, 1, 1], [], []>} : vector<2x32xf32>, vector<32x128xf32>, vector<2x128xf32> -> vector<2x128xf32>
    %262 = arith.addf %260, %261 : vector<2x128xf32>
    %263 = vector.broadcast %12 : vector<1x128xf32> to vector<2x128xf32>
    %264 = arith.addf %262, %263 : vector<2x128xf32>
    %265 = math.tanh %264 : vector<2x128xf32>
    %266 = arith.negf %264 : vector<2x128xf32>
    %267 = math.exp %266 : vector<2x128xf32>
    %cst_52 = arith.constant 1.000000e+00 : f32
    %268 = vector.broadcast %cst_52 : f32 to vector<2x128xf32>
    %269 = arith.addf %268, %267 : vector<2x128xf32>
    %270 = arith.divf %268, %269 : vector<2x128xf32>
    %271 = arith.select %6, %265, %270 : vector<2x128xi1>, vector<2x128xf32>
    %272 = vector.extract_strided_slice %271 {offsets = [0, 0], sizes = [2, 32], strides = [1, 1]} : vector<2x128xf32> to vector<2x32xf32>
    %273 = vector.extract_strided_slice %271 {offsets = [0, 32], sizes = [2, 32], strides = [1, 1]} : vector<2x128xf32> to vector<2x32xf32>
    %274 = vector.extract_strided_slice %271 {offsets = [0, 64], sizes = [2, 32], strides = [1, 1]} : vector<2x128xf32> to vector<2x32xf32>
    %275 = vector.extract_strided_slice %271 {offsets = [0, 96], sizes = [2, 32], strides = [1, 1]} : vector<2x128xf32> to vector<2x32xf32>
    %276 = arith.mulf %273, %234 : vector<2x32xf32>
    %277 = arith.mulf %272, %274 : vector<2x32xf32>
    %278 = arith.addf %276, %277 : vector<2x32xf32>
    %279 = math.tanh %278 : vector<2x32xf32>
    %280 = arith.mulf %275, %279 : vector<2x32xf32>
    %281 = vector.extract_strided_slice %0 {offsets = [0, 6, 0], sizes = [2, 1, 16], strides = [1, 1, 1]} : vector<2x8x16xf32> to vector<2x1x16xf32>
    %282 = vector.shape_cast %281 : vector<2x1x16xf32> to vector<2x16xf32>
    %cst_53 = arith.constant dense<0.000000e+00> : vector<2x128xf32>
    %283 = tpu.matmul %282, %7, %cst_53 {dimension_numbers = #tpu.dot_dimension_numbers<[1], [0], [0], [1], [0, 0, 1, 1], [], []>} : vector<2x16xf32>, vector<16x128xf32>, vector<2x128xf32> -> vector<2x128xf32>
    %cst_54 = arith.constant dense<0.000000e+00> : vector<2x128xf32>
    %284 = tpu.matmul %259, %9, %cst_54 {dimension_numbers = #tpu.dot_dimension_numbers<[1], [0], [0], [1], [0, 0, 1, 1], [], []>} : vector<2x32xf32>, vector<32x128xf32>, vector<2x128xf32> -> vector<2x128xf32>
    %285 = arith.addf %283, %284 : vector<2x128xf32>
    %286 = vector.broadcast %11 : vector<1x128xf32> to vector<2x128xf32>
    %287 = arith.addf %285, %286 : vector<2x128xf32>
    %288 = math.tanh %287 : vector<2x128xf32>
    %289 = arith.negf %287 : vector<2x128xf32>
    %290 = math.exp %289 : vector<2x128xf32>
    %cst_55 = arith.constant 1.000000e+00 : f32
    %291 = vector.broadcast %cst_55 : f32 to vector<2x128xf32>
    %292 = arith.addf %291, %290 : vector<2x128xf32>
    %293 = arith.divf %291, %292 : vector<2x128xf32>
    %294 = arith.select %6, %288, %293 : vector<2x128xi1>, vector<2x128xf32>
    %295 = vector.extract_strided_slice %294 {offsets = [0, 0], sizes = [2, 32], strides = [1, 1]} : vector<2x128xf32> to vector<2x32xf32>
    %296 = vector.extract_strided_slice %294 {offsets = [0, 32], sizes = [2, 32], strides = [1, 1]} : vector<2x128xf32> to vector<2x32xf32>
    %297 = vector.extract_strided_slice %294 {offsets = [0, 64], sizes = [2, 32], strides = [1, 1]} : vector<2x128xf32> to vector<2x32xf32>
    %298 = vector.extract_strided_slice %294 {offsets = [0, 96], sizes = [2, 32], strides = [1, 1]} : vector<2x128xf32> to vector<2x32xf32>
    %299 = arith.mulf %296, %257 : vector<2x32xf32>
    %300 = arith.mulf %295, %297 : vector<2x32xf32>
    %301 = arith.addf %299, %300 : vector<2x32xf32>
    %302 = math.tanh %301 : vector<2x32xf32>
    %303 = arith.mulf %298, %302 : vector<2x32xf32>
    %cst_56 = arith.constant dense<0.000000e+00> : vector<2x128xf32>
    %304 = tpu.matmul %303, %8, %cst_56 {dimension_numbers = #tpu.dot_dimension_numbers<[1], [0], [0], [1], [0, 0, 1, 1], [], []>} : vector<2x32xf32>, vector<32x128xf32>, vector<2x128xf32> -> vector<2x128xf32>
    %cst_57 = arith.constant dense<0.000000e+00> : vector<2x128xf32>
    %305 = tpu.matmul %280, %10, %cst_57 {dimension_numbers = #tpu.dot_dimension_numbers<[1], [0], [0], [1], [0, 0, 1, 1], [], []>} : vector<2x32xf32>, vector<32x128xf32>, vector<2x128xf32> -> vector<2x128xf32>
    %306 = arith.addf %304, %305 : vector<2x128xf32>
    %307 = vector.broadcast %12 : vector<1x128xf32> to vector<2x128xf32>
    %308 = arith.addf %306, %307 : vector<2x128xf32>
    %309 = math.tanh %308 : vector<2x128xf32>
    %310 = arith.negf %308 : vector<2x128xf32>
    %311 = math.exp %310 : vector<2x128xf32>
    %cst_58 = arith.constant 1.000000e+00 : f32
    %312 = vector.broadcast %cst_58 : f32 to vector<2x128xf32>
    %313 = arith.addf %312, %311 : vector<2x128xf32>
    %314 = arith.divf %312, %313 : vector<2x128xf32>
    %315 = arith.select %6, %309, %314 : vector<2x128xi1>, vector<2x128xf32>
    %316 = vector.extract_strided_slice %315 {offsets = [0, 0], sizes = [2, 32], strides = [1, 1]} : vector<2x128xf32> to vector<2x32xf32>
    %317 = vector.extract_strided_slice %315 {offsets = [0, 32], sizes = [2, 32], strides = [1, 1]} : vector<2x128xf32> to vector<2x32xf32>
    %318 = vector.extract_strided_slice %315 {offsets = [0, 64], sizes = [2, 32], strides = [1, 1]} : vector<2x128xf32> to vector<2x32xf32>
    %319 = vector.extract_strided_slice %315 {offsets = [0, 96], sizes = [2, 32], strides = [1, 1]} : vector<2x128xf32> to vector<2x32xf32>
    %320 = arith.mulf %317, %278 : vector<2x32xf32>
    %321 = arith.mulf %316, %318 : vector<2x32xf32>
    %322 = arith.addf %320, %321 : vector<2x32xf32>
    %323 = math.tanh %322 : vector<2x32xf32>
    %324 = arith.mulf %319, %323 : vector<2x32xf32>
    %325 = vector.extract_strided_slice %0 {offsets = [0, 7, 0], sizes = [2, 1, 16], strides = [1, 1, 1]} : vector<2x8x16xf32> to vector<2x1x16xf32>
    %326 = vector.shape_cast %325 : vector<2x1x16xf32> to vector<2x16xf32>
    %cst_59 = arith.constant dense<0.000000e+00> : vector<2x128xf32>
    %327 = tpu.matmul %326, %7, %cst_59 {dimension_numbers = #tpu.dot_dimension_numbers<[1], [0], [0], [1], [0, 0, 1, 1], [], []>} : vector<2x16xf32>, vector<16x128xf32>, vector<2x128xf32> -> vector<2x128xf32>
    %cst_60 = arith.constant dense<0.000000e+00> : vector<2x128xf32>
    %328 = tpu.matmul %303, %9, %cst_60 {dimension_numbers = #tpu.dot_dimension_numbers<[1], [0], [0], [1], [0, 0, 1, 1], [], []>} : vector<2x32xf32>, vector<32x128xf32>, vector<2x128xf32> -> vector<2x128xf32>
    %329 = arith.addf %327, %328 : vector<2x128xf32>
    %330 = vector.broadcast %11 : vector<1x128xf32> to vector<2x128xf32>
    %331 = arith.addf %329, %330 : vector<2x128xf32>
    %332 = math.tanh %331 : vector<2x128xf32>
    %333 = arith.negf %331 : vector<2x128xf32>
    %334 = math.exp %333 : vector<2x128xf32>
    %cst_61 = arith.constant 1.000000e+00 : f32
    %335 = vector.broadcast %cst_61 : f32 to vector<2x128xf32>
    %336 = arith.addf %335, %334 : vector<2x128xf32>
    %337 = arith.divf %335, %336 : vector<2x128xf32>
    %338 = arith.select %6, %332, %337 : vector<2x128xi1>, vector<2x128xf32>
    %339 = vector.extract_strided_slice %338 {offsets = [0, 0], sizes = [2, 32], strides = [1, 1]} : vector<2x128xf32> to vector<2x32xf32>
    %340 = vector.extract_strided_slice %338 {offsets = [0, 32], sizes = [2, 32], strides = [1, 1]} : vector<2x128xf32> to vector<2x32xf32>
    %341 = vector.extract_strided_slice %338 {offsets = [0, 64], sizes = [2, 32], strides = [1, 1]} : vector<2x128xf32> to vector<2x32xf32>
    %342 = vector.extract_strided_slice %338 {offsets = [0, 96], sizes = [2, 32], strides = [1, 1]} : vector<2x128xf32> to vector<2x32xf32>
    %343 = arith.mulf %340, %301 : vector<2x32xf32>
    %344 = arith.mulf %339, %341 : vector<2x32xf32>
    %345 = arith.addf %343, %344 : vector<2x32xf32>
    %346 = math.tanh %345 : vector<2x32xf32>
    %347 = arith.mulf %342, %346 : vector<2x32xf32>
    %cst_62 = arith.constant dense<0.000000e+00> : vector<2x128xf32>
    %348 = tpu.matmul %347, %8, %cst_62 {dimension_numbers = #tpu.dot_dimension_numbers<[1], [0], [0], [1], [0, 0, 1, 1], [], []>} : vector<2x32xf32>, vector<32x128xf32>, vector<2x128xf32> -> vector<2x128xf32>
    %cst_63 = arith.constant dense<0.000000e+00> : vector<2x128xf32>
    %349 = tpu.matmul %324, %10, %cst_63 {dimension_numbers = #tpu.dot_dimension_numbers<[1], [0], [0], [1], [0, 0, 1, 1], [], []>} : vector<2x32xf32>, vector<32x128xf32>, vector<2x128xf32> -> vector<2x128xf32>
    %350 = arith.addf %348, %349 : vector<2x128xf32>
    %351 = vector.broadcast %12 : vector<1x128xf32> to vector<2x128xf32>
    %352 = arith.addf %350, %351 : vector<2x128xf32>
    %353 = math.tanh %352 : vector<2x128xf32>
    %354 = arith.negf %352 : vector<2x128xf32>
    %355 = math.exp %354 : vector<2x128xf32>
    %cst_64 = arith.constant 1.000000e+00 : f32
    %356 = vector.broadcast %cst_64 : f32 to vector<2x128xf32>
    %357 = arith.addf %356, %355 : vector<2x128xf32>
    %358 = arith.divf %356, %357 : vector<2x128xf32>
    %359 = arith.select %6, %353, %358 : vector<2x128xi1>, vector<2x128xf32>
    %360 = vector.extract_strided_slice %359 {offsets = [0, 0], sizes = [2, 32], strides = [1, 1]} : vector<2x128xf32> to vector<2x32xf32>
    %361 = vector.extract_strided_slice %359 {offsets = [0, 32], sizes = [2, 32], strides = [1, 1]} : vector<2x128xf32> to vector<2x32xf32>
    %362 = vector.extract_strided_slice %359 {offsets = [0, 64], sizes = [2, 32], strides = [1, 1]} : vector<2x128xf32> to vector<2x32xf32>
    %363 = vector.extract_strided_slice %359 {offsets = [0, 96], sizes = [2, 32], strides = [1, 1]} : vector<2x128xf32> to vector<2x32xf32>
    %364 = arith.mulf %361, %322 : vector<2x32xf32>
    %365 = arith.mulf %360, %362 : vector<2x32xf32>
    %366 = arith.addf %364, %365 : vector<2x32xf32>
    %367 = math.tanh %366 : vector<2x32xf32>
    %368 = arith.mulf %363, %367 : vector<2x32xf32>
    %c0_65 = arith.constant 0 : index
    %c0_66 = arith.constant 0 : index
    %369 = vector.load %arg7[%c0_65, %c0_66] : memref<32x4xf32, #tpu.memory_space<vmem>>, vector<32x4xf32>
    %cst_67 = arith.constant dense<0.000000e+00> : vector<2x4xf32>
    %370 = tpu.matmul %368, %369, %cst_67 {dimension_numbers = #tpu.dot_dimension_numbers<[1], [0], [0], [1], [0, 0, 1, 1], [], []>} : vector<2x32xf32>, vector<32x4xf32>, vector<2x4xf32> -> vector<2x4xf32>
    %c0_68 = arith.constant 0 : index
    %c0_69 = arith.constant 0 : index
    %371 = vector.load %arg8[%c0_68, %c0_69] : memref<1x4xf32, #tpu.memory_space<vmem>>, vector<1x4xf32>
    %372 = vector.broadcast %371 : vector<1x4xf32> to vector<2x4xf32>
    %373 = arith.addf %370, %372 : vector<2x4xf32>
    %374 = arith.mulf %373, %373 : vector<2x4xf32>
    %cst_70 = arith.constant dense<0.000000e+00> : vector<2xf32>
    %375 = vector.multi_reduction <add>, %374, %cst_70 [1] : vector<2x4xf32> to vector<2xf32>
    %376 = vector.shape_cast %375 : vector<2xf32> to vector<2x1xf32>
    %377 = math.sqrt %376 : vector<2x1xf32>
    %378 = tpu.reciprocal %377 : vector<2x1xf32> -> vector<2x1xf32>
    %379 = vector.broadcast %378 : vector<2x1xf32> to vector<2x4xf32>
    %380 = arith.mulf %373, %379 : vector<2x4xf32>
    %c0_71 = arith.constant 0 : index
    %c0_72 = arith.constant 0 : index
    %381 = vector.load %arg9[%c0_71, %c0_72] : memref<2x4xf32, #tpu.memory_space<vmem>>, vector<2x4xf32>
    tpu.vector_store %arg9[%c0_71, %c0_72], %380 {strides = array<i32>} : memref<2x4xf32, #tpu.memory_space<vmem>>, vector<2x4xf32>,
    return
  }
}

</mosaic_0001>

<bundles_post_ra>
// kernel: lstm_forward.1
= control target key start
LH: loop header
LB: loop body
LE: loop exit
PB: predicated region body
PF: predicated region fallthrough
CT: control target
= control target key end

     0   :  { %14 = vsyncpa [#allocation3], 0  ;;  %s4600_s0 = inlined_call_operand.hbm [shape: f32[2,8,16], index: 0, kind: input, shape index: {}]   ;;  %s4601_s1 = inlined_call_operand.hbm [shape: f32[16,128], index: 1, kind: input, shape index: {}]   ;;  %s4602_s2 = inlined_call_operand.vmem [shape: f32[32,128], index: 2, kind: input, shape index: {}]   ;;  %s4603_s3 = inlined_call_operand.vmem [shape: f32[1,128], index: 3, kind: input, shape index: {}]   ;;  %s4604_s4 = inlined_call_operand.hbm [shape: f32[32,128], index: 4, kind: input, shape index: {}]   ;;  %s4605_s5 = inlined_call_operand.hbm [shape: f32[32,128], index: 5, kind: input, shape index: {}]   ;;  %s4606_s6 = inlined_call_operand.vmem [shape: f32[1,128], index: 6, kind: input, shape index: {}]   ;;  %s4607_s7 = inlined_call_operand.vmem [shape: f32[32,4], index: 7, kind: input, shape index: {}]   ;;  %s4608_s8 = inlined_call_operand.vmem [shape: f32[1,4], index: 8, kind: input, shape index: {}]   ;;  %s4609_s9 = inlined_call_operand.hbm [shape: f32[2,4], index: 9, kind: output, shape index: {}]  }
   0x1   :  { %15 = vsyncpa [#allocation6], 0 }
   0x2   :  { %16 = vsyncpa [#allocation9], 0 }
   0x3   :  { %17 = vsyncpa [#allocation4], 0  ;;  %s3988_s30 = smov [#allocation5]   ;;  %s3989_s11 = smov [#allocation2]  }
   0x4   :  { %s35_s10 = sshll.u32 %s3988_s30, 4  ;;  %s23_s12 = sshll.u32 %s3989_s11, 4  ;;  %s36_s10 = int_to_ptr.vmem [resolvable:$true] %s35_s10  ;;  %s4050_s12 = int_to_ptr.vmem [resolvable:$true] %s23_s12 }
   0x5   :  { %s3870_s15 = scalar_lea.hbm %s4601_s1, 256 }
   0x6   :  { %p3871_p0 = scmp.ne.s32.totalorder %s4601_s1, %s3870_s15  ;;  %p3874_p1 = scmp.lt.u32.totalorder %s3870_s15, %s4601_s1 }
   0x8   :  { %p3876_p2 = pnand %p3874_p1, %p3871_p0 }
   0xa   :  { %3879 = shalt.err (!%p3876_p2)
}
   0xb   :  { %s3880_s20 = scalar_lea.vmem %s36_s10, 256  ;;  %p3885_p4 = scmp.lt.s32.totalorder %s36_s10, %s36_s10 }
   0xc   :  { %p3881_p3 = scmp.ne.s32.totalorder %s36_s10, %s3880_s20  ;;  %p3886_p5 = scmp.lt.s32.totalorder %s3880_s20, %s3880_s20 }
   0xe   :  { %p3887_p6 = por %p3886_p5, %p3885_p4 }
  0x10   :  { %p3888_p7 = pnand %p3887_p6, %p3881_p3 }
  0x12   :  { %3891 = shalt.err (!%p3888_p7)
}
  0x13   :  { %s3990_s21 = smov 128   ;;  %s3991_s22 = smov 8  }
  0x14   :  { %41 = dma.hbm_to_vmem [thread:$0]  %s4601_s1, 256, %s36_s10, [#allocation6], %s3990_s21, %s3990_s21, %s3991_s22  }
  0x15   :  { %s3892_s27 = scalar_lea.hbm %s4600_s0, 256 }
  0x16   :  { %p3893_p8 = scmp.ne.s32.totalorder %s4600_s0, %s3892_s27  ;;  %p3896_p9 = scmp.lt.u32.totalorder %s3892_s27, %s4600_s0 }
  0x18   :  { %p3898_p10 = pnand %p3896_p9, %p3893_p8 }
  0x1a   :  { %3901 = shalt.err (!%p3898_p10)
}
  0x1b   :  { %s3902_s13 = scalar_lea.vmem %s4050_s12, 256  ;;  %p3907_p12 = scmp.lt.s32.totalorder %s4050_s12, %s4050_s12 }
  0x1c   :  { %p3903_p11 = scmp.ne.s32.totalorder %s4050_s12, %s3902_s13  ;;  %p3908_p13 = scmp.lt.s32.totalorder %s3902_s13, %s3902_s13 }
  0x1e   :  { %p3909_p0 = por %p3908_p13, %p3907_p12 }
  0x20   :  { %p3910_p1 = pnand %p3909_p0, %p3903_p11 }
  0x22   :  { %3913 = shalt.err (!%p3910_p1)
}
  0x23   :  { %29 = dma.hbm_to_vmem [thread:$0]  %s4600_s0, 256, %s4050_s12, [#allocation3], %s3990_s21, %s3990_s21, %s3991_s22  }
  0x24   :  { %s3992_s14 = smov [#allocation7]   ;;  %s3993_s16 = smov [#allocation8]  }
  0x25   :  { %s51_s15 = sshll.u32 %s3992_s14, 4  ;;  %s63_s17 = sshll.u32 %s3993_s16, 4  ;;  %s52_s15 = int_to_ptr.vmem [resolvable:$true] %s51_s15  ;;  %s4087_s17 = int_to_ptr.vmem [resolvable:$true] %s63_s17 }
  0x26   :  { %s3914_s20 = scalar_lea.hbm %s4604_s4, 512 }
  0x27   :  { %p3915_p2 = scmp.ne.s32.totalorder %s4604_s4, %s3914_s20  ;;  %p3918_p3 = scmp.lt.u32.totalorder %s3914_s20, %s4604_s4 }
  0x29   :  { %p3920_p4 = pnand %p3918_p3, %p3915_p2 }
  0x2b   :  { %3923 = shalt.err (!%p3920_p4)
}
  0x2c   :  { %s3924_s0 = scalar_lea.vmem %s52_s15, 512  ;;  %p3929_p6 = scmp.lt.s32.totalorder %s52_s15, %s52_s15 }
  0x2d   :  { %p3925_p5 = scmp.ne.s32.totalorder %s52_s15, %s3924_s0  ;;  %p3930_p7 = scmp.lt.s32.totalorder %s3924_s0, %s3924_s0 }
  0x2f   :  { %p3931_p8 = por %p3930_p7, %p3929_p6 }
  0x31   :  { %p3932_p9 = pnand %p3931_p8, %p3925_p5 }
  0x33   :  { %3935 = shalt.err (!%p3932_p9)
}
  0x34   :  { %57 = dma.hbm_to_vmem [thread:$0]  %s4604_s4, 512, %s52_s15, [#allocation6], %s3990_s21, %s3990_s21, %s3991_s22  }
  0x35   :  { %s3936_s30 = scalar_lea.hbm %s4605_s5, 512 }
  0x36   :  { %p3937_p10 = scmp.ne.s32.totalorder %s4605_s5, %s3936_s30  ;;  %p3940_p11 = scmp.lt.u32.totalorder %s3936_s30, %s4605_s5 }
  0x38   :  { %p3942_p12 = pnand %p3940_p11, %p3937_p10 }
  0x3a   :  { %3945 = shalt.err (!%p3942_p12)
}
  0x3b   :  { %s3946_s14 = scalar_lea.vmem %s4087_s17, 512  ;;  %p3951_p0 = scmp.lt.s32.totalorder %s4087_s17, %s4087_s17 }
  0x3c   :  { %p3947_p13 = scmp.ne.s32.totalorder %s4087_s17, %s3946_s14  ;;  %p3952_p1 = scmp.lt.s32.totalorder %s3946_s14, %s3946_s14 }
  0x3e   :  { %p3953_p2 = por %p3952_p1, %p3951_p0 }
  0x40   :  { %p3954_p3 = pnand %p3953_p2, %p3947_p13 }
  0x42   :  { %3957 = shalt.err (!%p3954_p3)
}
  0x43   :  { %69 = dma.hbm_to_vmem [thread:$0]  %s4605_s5, 512, %s4087_s17, [#allocation9], %s3990_s21, %s3990_s21, %s3991_s22  }
  0x44   :  { %3980 = dma.done.wait [#allocation3], 256  }
  0x45   :  { %3981 = vsyncadd [#allocation3], 4294967040 }
  0x46   :  { %3982 = dma.done.wait [#allocation6], 768  }
  0x47   :  { %3983 = vsyncadd [#allocation6], 4294966528 }
  0x48   :  { %3984 = dma.done.wait [#allocation9], 512  }
  0x49   :  { %3985 = vsyncadd [#allocation9], 4294966784  ;;  %v3994_v0 = vmov 0.0|0.0   ;;  %vm3995_vm0 = vmmov 0   ;;  %v3996_v1 = vmov 0.0   ;;  %v101_v2 = vld [vmem:[%s4602_s2] sm:$0xff]  ;;  %v90_v24 = vlaneseq }
  0x4a   :  { %3548 = vmatprep.subr.bf16.mxu0 %v3994_v0  ;;  %3554 = vmatprep.subr.bf16.mxu1 %v3994_v0  ;;  %v102_v3 = vld [vmem:[%s4602_s2 + $0x8] sm:$0xff]  ;;  %v95_v4 = vld [vmem:[#allocation5] sm:$0xff]  ;;  %v96_v6 = vld [vmem:[#allocation5 + $0x8] sm:$0xff]  ;;  %vm188_vm1 = vcmask 1041409   ;;  %vm190_vm2 = vcmask 130048   ;;  %s3997_s24 = smov 64  }
  0x4b   :  { %3232 = vmatprep.mubr.msk.f32.mxu1 %vm3995_vm0, %v3996_v1  ;;  %3225 = vmatprep.mubr.msk.f32.mxu0 %vm3995_vm0, %v3996_v1  ;;  %v4136_v5 = vpack.c.bf16 %v102_v3, %v101_v2  ;;  %v103_v7 = vld [vmem:[%s4602_s2 + $0x10] sm:$0xff]  ;;  %v104_v8 = vld [vmem:[%s4602_s2 + $0x18] sm:$0xff]  ;;  %v4144_v9 = vpack.c.bf16 %v96_v6, %v95_v4  ;;  %v4146_v10 = vld [vmem:[#allocation2] sm:$0xff]  ;;  %v91_v26 = vand.u32 127, %v90_v24  ;;  %s3998_s25 = smov 32   ;;  %vm111_vm6 = vcmask 261120  }
  0x4c   :  { %v4148_v11 = vld [vmem:[#allocation2 + $0x8] sm:$0xff]  ;;  %v4151_v12 = vpack.c.bf16 %v104_v8, %v103_v7  ;;  %v4170_v17 = vld [vmem:[%s4603_s3] ss:$0 sm:$0xff]  ;;  %v107_v38 = vld [vmem:[#allocation8 + $0x10] sm:$0xff]  ;;  %v542_v53 = vrot.slane %v4146_v10, 1  ;;  %vm2987_vm7 = vcmask 25600  }
  0x4d   :  { %3550 = vmatpush3.bf16.msra.mxu0 %v4136_v5  ;;  %v187_v13 = vrot.slane %v4148_v11, 7  ;;  %3556 = vmatpush3.bf16.msra.mxu1 %v4144_v9  ;;  %vm92_vm3 = vcmp.ge.s32.totalorder %v91_v26, 64  ;;  %vm93_vm4 = vcmp.lt.s32.totalorder %v91_v26, 96  ;;  %v105_v36 = vld [vmem:[#allocation8] sm:$0xff]  ;;  %v106_v37 = vld [vmem:[#allocation8 + $0x8] sm:$0xff]  ;;  %v108_v40 = vld [vmem:[#allocation8 + $0x18] sm:$0xff] }
  0x4e   :  { %3551 = vmatprep.subr.bf16.mxu0 %v3994_v0  ;;  %3557 = vmatprep.subr.bf16.mxu1 %v3994_v0  ;;  %vm4173_vm5 = vmand %vm92_vm3, %vm93_vm4  ;;  %v4184_v39 = vpack.c.bf16 %v106_v37, %v105_v36  ;;  %v97_v41 = vld [vmem:[#allocation7] sm:$0xff]  ;;  %v98_v42 = vld [vmem:[#allocation7 + $0x8] sm:$0xff]  ;;  %v4189_v46 = vpack.c.bf16 %v108_v40, %v107_v38  ;;  %v543_v55 = vsel %vm188_vm1, %v4148_v11, %v542_v53 }
  0x4f   :  { %v189_v14 = vsel %vm188_vm1, %v187_v13, %v4146_v10  ;;  %v4186_v43 = vpack.c.bf16 %v98_v42, %v97_v41  ;;  %v99_v44 = vld [vmem:[#allocation7 + $0x10] sm:$0xff]  ;;  %v100_v45 = vld [vmem:[#allocation7 + $0x18] sm:$0xff]  ;;  %v4234_v56 = vld [vmem:[%s4606_s6] ss:$0 sm:$0xff]  ;;  %v888_v42 = vrot.slane %v4146_v10, 2 }
  0x50   :  { %3233 = vmatmul.mubr.msk.f32.vlgmr.msra.gmra.mrb[0].mxu1 %vm190_vm2, %v189_v14  ;;  %v4193_v47 = vpack.c.bf16 %v100_v45, %v99_v44  ;;  %v889_v44 = vrot.slane %v4148_v11, 1  ;;  %v2902_v27 = vld [vmem:[%s4607_s7 + $0x10] sm:$0xff] }
  0x51   :  { %3553 = vmatpush3.bf16.msra.mxu0 %v4151_v12  ;;  %3243 = vmatprep.mubr.msk.f32.mxu1 %vm3995_vm0, %v3996_v1 }
  0x52   :  { %3563 = vmatprep.subr.bf16.mxu0 %v3994_v0  ;;  %3559 = vmatpush3.bf16.msra.mxu1 %v4184_v39 }
  0x53   :  { %3560 = vmatprep.subr.bf16.mxu1 %v3994_v0 }
  0x54   :  { %3226 = vmatmul.mubr.f32.vlgmr.msra.gmra.mrb[0].mxu0 %v3996_v1 }
  0x55   :  { %3254 = vmatprep.mubr.msk.f32.mxu0 %vm3995_vm0, %v3996_v1  ;;  %3565 = vmatpush3.bf16.msra.mxu0 %v4186_v43 }
  0x56   :  { %3566 = vmatprep.subr.bf16.mxu0 %v3994_v0  ;;  %3562 = vmatpush3.bf16.msra.mxu1 %v4189_v46 }
  0x57   :  { %3569 = vmatprep.subr.bf16.mxu1 %v3994_v0 }
  0x59   :  { %3568 = vmatpush3.bf16.msra.mxu0 %v4193_v47  ;;  %3244 = vmatmul.mubr.f32.vlgmr.msra.gmra.mrb[2].mxu1 %v3996_v1 }
  0x5a   :  { %3578 = vmatprep.subr.bf16.mxu0 %v3994_v0  ;;  %3571 = vmatpush3.bf16.msra.mxu1 %v4136_v5 }
  0x5b   :  { %3572 = vmatprep.subr.bf16.mxu1 %v3994_v0  ;;  %3265 = vmatprep.mubr.msk.f32.mxu1 %vm3995_vm0, %v3996_v1 }
  0x5e   :  { %3574 = vmatpush3.bf16.msra.mxu1 %v4151_v12 }
  0x5f   :  { %3575 = vmatprep.subr.bf16.mxu1 %v3994_v0 }
 0x123   :  { %v259_v15 = vpop.f32.mrb[0].mxu1 }
 0x124   :  { %v3234_v16 = vpop.f32.mrb[1].mxu1 }
 0x127   :  { %v181_v18 = vpop.f32.mrb[0].mxu0 }
 0x128   :  { %v260_v19 = vadd.f32 %v259_v15, %v181_v18  ;;  %v3227_v20 = vpop.f32.mrb[1].mxu0 }
 0x12a   :  { %v269_v21 = vadd.f32 %v4170_v17, %v260_v19 }
 0x12c   :  { %v3020_v22 = vmul.f32 -1.442695, %v269_v21  ;;  %v361_v51 = vpop.f32.mrb[2].mxu1 }
 0x12d   :  { %v3245_v52 = vpop.f32.mrb[3].mxu1 }
 0x12e   :  { %3734 = vpow2.f32 %v3020_v22 }
 0x12f   :  { %3736 = vtanh.f32 %v269_v21 }
 0x138   :  { %v3735_v23 = vpop.eup %3734 }
 0x139   :  { %v274_v25 = vadd.f32 1.0, %v3735_v23  ;;  %v3737_v28 = vpop.eup %3736 }
 0x13b   :  { %3738 = vrcp.f32 %v274_v25 }
 0x145   :  { %v3739_v29 = vpop.eup %3738 }
 0x146   :  { %v277_v30 = vsel %vm4173_vm5, %v3737_v28, %v3739_v29 }
 0x147   :  { %280 = vrot.lane.b32.xlu0 %v277_v30, %s3997_s24  ;;  %v278_v33 = vmul.f32 0.0, %v277_v30 }
 0x1b9   :  { %v281_v31 = vpop.permute.xlu0 %280 }
 0x1ba   :  { %v283_v32 = vmul.f32 %v281_v31, %v277_v30 }
 0x1bc   :  { %285 = vrot.lane.b32.xlu0 %v283_v32, %s3998_s25 }
 0x22e   :  { %v286_v34 = vpop.permute.xlu0 %285 }
 0x22f   :  { %v4181_v35 = vadd.f32 %v286_v34, %v278_v33 }
 0x231   :  { %3740 = vtanh.f32 %v4181_v35 }
 0x23b   :  { %v3741_v48 = vpop.eup %3740 }
 0x23c   :  { %291 = vrot.lane.b32.xlu1 %v3741_v48, %s3997_s24  ;;  %v890_v48 = vsel %vm188_vm1, %v889_v44, %v888_v42 }
 0x2ae   :  { %v292_v49 = vpop.permute.xlu1 %291 }
 0x2af   :  { %v294_v50 = vmul.f32 %v292_v49, %v277_v30 }
 0x2b1   :  { %366 = vrot.lane.b32.xlu1 %v294_v50, %s3998_s25 }
 0x323   :  { %v367_v54 = vpop.permute.xlu1 %366 }
 0x324   :  { %3255 = vmatmul.mubr.msk.f32.vlgmr.msra.gmra.mrb[2].mxu0 %vm111_vm6, %v367_v54  ;;  %3266 = vmatmul.mubr.msk.f32.vlgmr.msra.gmra.mrb[4].mxu1 %vm111_vm6, %v367_v54 }
 0x325   :  { %3577 = vmatpush3.bf16.msra.mxu1 %v4144_v9  ;;  %3272 = vmatprep.mubr.msk.f32.mxu1 %vm3995_vm0, %v3996_v1 }
 0x326   :  { %3580 = vmatpush3.bf16.msra.mxu0 %v4184_v39  ;;  %3584 = vmatprep.subr.bf16.mxu1 %v3994_v0 }
 0x327   :  { %3581 = vmatprep.subr.bf16.mxu0 %v3994_v0  ;;  %3283 = vmatprep.mubr.msk.f32.mxu0 %vm3995_vm0, %v3996_v1 }
 0x328   :  { %3273 = vmatmul.mubr.msk.f32.vlgmr.msra.gmra.mrb[6].mxu1 %vm190_vm2, %v543_v55 }
 0x329   :  { %3586 = vmatpush3.bf16.msra.mxu1 %v4186_v43  ;;  %3294 = vmatprep.mubr.msk.f32.mxu1 %vm3995_vm0, %v3996_v1 }
 0x32a   :  { %3583 = vmatpush3.bf16.msra.mxu0 %v4189_v46  ;;  %3587 = vmatprep.subr.bf16.mxu1 %v3994_v0 }
 0x32b   :  { %3590 = vmatprep.subr.bf16.mxu0 %v3994_v0 }
 0x32d   :  { %3589 = vmatpush3.bf16.msra.mxu1 %v4193_v47 }
 0x32e   :  { %3596 = vmatprep.subr.bf16.mxu1 %v3994_v0 }
 0x3f7   :  { %v436_v57 = vpop.f32.mrb[2].mxu0  ;;  %v538_v58 = vpop.f32.mrb[4].mxu1 }
 0x3f8   :  { %v437_v59 = vadd.f32 %v436_v57, %v361_v51  ;;  %v3256_v60 = vpop.f32.mrb[3].mxu0  ;;  %v3267_v61 = vpop.f32.mrb[5].mxu1 }
 0x3fa   :  { %v446_v62 = vadd.f32 %v4234_v56, %v437_v59 }
 0x3fb   :  { %v612_v63 = vpop.f32.mrb[6].mxu1 }
 0x3fc   :  { %v3023_v2 = vmul.f32 -1.442695, %v446_v62  ;;  %v613_v3 = vadd.f32 %v612_v63, %v538_v58  ;;  %v3274_v4 = vpop.f32.mrb[7].mxu1 }
 0x3fe   :  { %3742 = vpow2.f32 %v3023_v2  ;;  %v616_v6 = vadd.f32 %v4170_v17, %v613_v3 }
 0x400   :  { %v3026_v7 = vmul.f32 -1.442695, %v616_v6 }
 0x402   :  { %3744 = vpow2.f32 %v3026_v7 }
 0x403   :  { %3746 = vtanh.f32 %v446_v62 }
 0x408   :  { %v3743_v8 = vpop.eup %3742 }
 0x409   :  { %v451_v13 = vadd.f32 1.0, %v3743_v8 }
 0x40b   :  { %3748 = vrcp.f32 %v451_v13 }
 0x40c   :  { %v3745_v14 = vpop.eup %3744  ;;  %3750 = vtanh.f32 %v616_v6 }
 0x40d   :  { %v621_v15 = vadd.f32 1.0, %v3745_v14  ;;  %v3747_v16 = vpop.eup %3746 }
 0x40f   :  { %3752 = vrcp.f32 %v621_v15 }
 0x415   :  { %v3749_v18 = vpop.eup %3748 }
 0x416   :  { %v454_v19 = vsel %vm4173_vm5, %v3747_v16, %v3749_v18  ;;  %v3751_v20 = vpop.eup %3750 }
 0x417   :  { %457 = vrot.lane.b32.xlu0 %v454_v19, %s3997_s24  ;;  %v455_v28 = vmul.f32 0.0, %v454_v19 }
 0x419   :  { %v3753_v21 = vpop.eup %3752 }
 0x41a   :  { %v624_v22 = vsel %vm4173_vm5, %v3751_v20, %v3753_v21 }
 0x41b   :  { %627 = vrot.lane.b32.xlu1 %v624_v22, %s3997_s24  ;;  %v625_v31 = vmul.f32 %v624_v22, %v4181_v35 }
 0x489   :  { %v458_v23 = vpop.permute.xlu0 %457 }
 0x48a   :  { %v460_v24 = vmul.f32 %v458_v23, %v454_v19 }
 0x48c   :  { %462 = vrot.lane.b32.xlu0 %v460_v24, %s3998_s25 }
 0x48d   :  { %v628_v25 = vpop.permute.xlu1 %627 }
 0x48e   :  { %v630_v26 = vmul.f32 %v628_v25, %v624_v22 }
 0x490   :  { %632 = vrot.lane.b32.xlu1 %v630_v26, %s3998_s25 }
 0x4fe   :  { %v463_v29 = vpop.permute.xlu0 %462 }
 0x4ff   :  { %v4246_v30 = vadd.f32 %v463_v29, %v455_v28 }
 0x501   :  { %3754 = vtanh.f32 %v4246_v30 }
 0x502   :  { %v633_v32 = vpop.permute.xlu1 %632 }
 0x503   :  { %v4250_v33 = vadd.f32 %v633_v32, %v625_v31 }
 0x505   :  { %3756 = vtanh.f32 %v4250_v33 }
 0x50b   :  { %v3755_v34 = vpop.eup %3754 }
 0x50c   :  { %468 = vrot.lane.b32.xlu0 %v3755_v34, %s3997_s24 }
 0x50f   :  { %v3757_v36 = vpop.eup %3756 }
 0x510   :  { %638 = vrot.lane.b32.xlu1 %v3757_v36, %s3997_s24 }
 0x57e   :  { %v469_v37 = vpop.permute.xlu0 %468 }
 0x57f   :  { %v471_v38 = vmul.f32 %v469_v37, %v454_v19  ;;  %v1235_v37 = vrot.slane %v4146_v10, 3 }
 0x581   :  { %643 = vrot.lane.b32.xlu0 %v471_v38, %s3998_s25  ;;  %v1236_v38 = vrot.slane %v4148_v11, 2 }
 0x582   :  { %v639_v40 = vpop.permute.xlu1 %638 }
 0x583   :  { %v641_v41 = vmul.f32 %v639_v40, %v624_v22 }
 0x585   :  { %718 = vrot.lane.b32.xlu1 %v641_v41, %s3998_s25  ;;  %v1237_v41 = vsel %vm188_vm1, %v1236_v38, %v1235_v37 }
 0x5f3   :  { %v644_v35 = vpop.permute.xlu0 %643 }
 0x5f4   :  { %3284 = vmatmul.mubr.msk.f32.vlgmr.msra.gmra.mrb[4].mxu0 %vm111_vm6, %v644_v35 }
 0x5f5   :  { %3592 = vmatpush3.bf16.msra.mxu0 %v4136_v5  ;;  %3305 = vmatprep.mubr.msk.f32.mxu0 %vm3995_vm0, %v3996_v1 }
 0x5f6   :  { %3593 = vmatprep.subr.bf16.mxu0 %v3994_v0 }
 0x5f7   :  { %v719_v45 = vpop.permute.xlu1 %718 }
 0x5f8   :  { %3295 = vmatmul.mubr.msk.f32.vlgmr.msra.gmra.mrb[8].mxu1 %vm111_vm6, %v719_v45 }
 0x5f9   :  { %3595 = vmatpush3.bf16.msra.mxu0 %v4151_v12  ;;  %3598 = vmatpush3.bf16.msra.mxu1 %v4144_v9 }
 0x5fa   :  { %3312 = vmatprep.mubr.msk.f32.mxu1 %vm3995_vm0, %v3996_v1  ;;  %3599 = vmatprep.subr.bf16.mxu1 %v3994_v0 }
 0x5fb   :  { %3605 = vmatprep.subr.bf16.mxu0 %v3994_v0 }
 0x5fc   :  { %3306 = vmatmul.mubr.msk.f32.vlgmr.msra.gmra.mrb[6].mxu0 %vm111_vm6, %v719_v45  ;;  %3313 = vmatmul.mubr.msk.f32.vlgmr.msra.gmra.mrb[10].mxu1 %vm190_vm2, %v890_v48 }
 0x5fd   :  { %3601 = vmatpush3.bf16.msra.mxu1 %v4184_v39  ;;  %3607 = vmatpush3.bf16.msra.mxu0 %v4186_v43 }
 0x5fe   :  { %3602 = vmatprep.subr.bf16.mxu1 %v3994_v0  ;;  %3323 = vmatprep.mubr.msk.f32.mxu1 %vm3995_vm0, %v3996_v1 }
 0x5ff   :  { %3608 = vmatprep.subr.bf16.mxu0 %v3994_v0  ;;  %3334 = vmatprep.mubr.msk.f32.mxu0 %vm3995_vm0, %v3996_v1 }
 0x601   :  { %3604 = vmatpush3.bf16.msra.mxu1 %v4189_v46  ;;  %3610 = vmatpush3.bf16.msra.mxu0 %v4193_v47 }
 0x602   :  { %3611 = vmatprep.subr.bf16.mxu1 %v3994_v0  ;;  %3617 = vmatprep.subr.bf16.mxu0 %v3994_v0 }
 0x6c7   :  { %v713_v49 = vpop.f32.mrb[4].mxu0 }
 0x6c8   :  { %v3285_v50 = vpop.f32.mrb[5].mxu0 }
 0x6cb   :  { %v788_v51 = vpop.f32.mrb[8].mxu1 }
 0x6cc   :  { %v789_v52 = vadd.f32 %v788_v51, %v713_v49  ;;  %v3296_v53 = vpop.f32.mrb[9].mxu1 }
 0x6ce   :  { %v792_v54 = vadd.f32 %v4234_v56, %v789_v52 }
 0x6cf   :  { %v884_v55 = vpop.f32.mrb[6].mxu0  ;;  %v959_v57 = vpop.f32.mrb[10].mxu1 }
 0x6d0   :  { %v3029_v58 = vmul.f32 -1.442695, %v792_v54  ;;  %v3307_v59 = vpop.f32.mrb[7].mxu0  ;;  %v960_v60 = vadd.f32 %v959_v57, %v884_v55  ;;  %v3314_v61 = vpop.f32.mrb[11].mxu1 }
 0x6d2   :  { %3758 = vpow2.f32 %v3029_v58  ;;  %v963_v62 = vadd.f32 %v4170_v17, %v960_v60 }
 0x6d4   :  { %v3032_v63 = vmul.f32 -1.442695, %v963_v62 }
 0x6d6   :  { %3760 = vpow2.f32 %v3032_v63 }
 0x6d7   :  { %3762 = vtanh.f32 %v792_v54 }
 0x6dc   :  { %v3759_v2 = vpop.eup %3758 }
 0x6dd   :  { %v797_v3 = vadd.f32 1.0, %v3759_v2 }
 0x6df   :  { %3764 = vrcp.f32 %v797_v3 }
 0x6e0   :  { %v3761_v4 = vpop.eup %3760  ;;  %3766 = vtanh.f32 %v963_v62 }
 0x6e1   :  { %v968_v6 = vadd.f32 1.0, %v3761_v4  ;;  %v3763_v7 = vpop.eup %3762 }
 0x6e3   :  { %3768 = vrcp.f32 %v968_v6 }
 0x6e9   :  { %v3765_v8 = vpop.eup %3764 }
 0x6ea   :  { %v800_v13 = vsel %vm4173_vm5, %v3763_v7, %v3765_v8  ;;  %v3767_v14 = vpop.eup %3766 }
 0x6eb   :  { %803 = vrot.lane.b32.xlu0 %v800_v13, %s3997_s24  ;;  %v801_v22 = vmul.f32 %v800_v13, %v4246_v30 }
 0x6ed   :  { %v3769_v15 = vpop.eup %3768 }
 0x6ee   :  { %v971_v16 = vsel %vm4173_vm5, %v3767_v14, %v3769_v15 }
 0x6ef   :  { %974 = vrot.lane.b32.xlu1 %v971_v16, %s3997_s24  ;;  %v972_v25 = vmul.f32 %v971_v16, %v4250_v33 }
 0x75d   :  { %v804_v18 = vpop.permute.xlu0 %803 }
 0x75e   :  { %v806_v19 = vmul.f32 %v804_v18, %v800_v13 }
 0x760   :  { %808 = vrot.lane.b32.xlu0 %v806_v19, %s3998_s25 }
 0x761   :  { %v975_v20 = vpop.permute.xlu1 %974 }
 0x762   :  { %v977_v21 = vmul.f32 %v975_v20, %v971_v16 }
 0x764   :  { %979 = vrot.lane.b32.xlu1 %v977_v21, %s3998_s25 }
 0x7d2   :  { %v809_v23 = vpop.permute.xlu0 %808 }
 0x7d3   :  { %v4297_v24 = vadd.f32 %v809_v23, %v801_v22 }
 0x7d5   :  { %3770 = vtanh.f32 %v4297_v24 }
 0x7d6   :  { %v980_v26 = vpop.permute.xlu1 %979 }
 0x7d7   :  { %v4301_v28 = vadd.f32 %v980_v26, %v972_v25 }
 0x7d9   :  { %3772 = vtanh.f32 %v4301_v28 }
 0x7df   :  { %v3771_v29 = vpop.eup %3770 }
 0x7e0   :  { %814 = vrot.lane.b32.xlu0 %v3771_v29, %s3997_s24 }
 0x7e3   :  { %v3773_v31 = vpop.eup %3772 }
 0x7e4   :  { %985 = vrot.lane.b32.xlu1 %v3773_v31, %s3997_s24 }
 0x852   :  { %v815_v32 = vpop.permute.xlu0 %814 }
 0x853   :  { %v817_v30 = vmul.f32 %v815_v32, %v800_v13  ;;  %v1582_v32 = vrot.slane %v4146_v10, 4 }
 0x855   :  { %990 = vrot.lane.b32.xlu0 %v817_v30, %s3998_s25  ;;  %v1583_v30 = vrot.slane %v4148_v11, 3 }
 0x856   :  { %v986_v34 = vpop.permute.xlu1 %985 }
 0x857   :  { %v988_v36 = vmul.f32 %v986_v34, %v971_v16 }
 0x859   :  { %1065 = vrot.lane.b32.xlu1 %v988_v36, %s3998_s25  ;;  %v1584_v36 = vsel %vm188_vm1, %v1583_v30, %v1582_v32 }
 0x8c7   :  { %v991_v33 = vpop.permute.xlu0 %990 }
 0x8c8   :  { %3324 = vmatmul.mubr.msk.f32.vlgmr.msra.gmra.mrb[12].mxu1 %vm111_vm6, %v991_v33 }
 0x8c9   :  { %3613 = vmatpush3.bf16.msra.mxu1 %v4136_v5  ;;  %3345 = vmatprep.mubr.msk.f32.mxu1 %vm3995_vm0, %v3996_v1 }
 0x8ca   :  { %3614 = vmatprep.subr.bf16.mxu1 %v3994_v0 }
 0x8cb   :  { %v1066_v40 = vpop.permute.xlu1 %1065 }
 0x8cc   :  { %3335 = vmatmul.mubr.msk.f32.vlgmr.msra.gmra.mrb[8].mxu0 %vm111_vm6, %v1066_v40 }
 0x8cd   :  { %3616 = vmatpush3.bf16.msra.mxu1 %v4151_v12  ;;  %3619 = vmatpush3.bf16.msra.mxu0 %v4144_v9 }
 0x8ce   :  { %3352 = vmatprep.mubr.msk.f32.mxu0 %vm3995_vm0, %v3996_v1  ;;  %3620 = vmatprep.subr.bf16.mxu0 %v3994_v0 }
 0x8cf   :  { %3626 = vmatprep.subr.bf16.mxu1 %v3994_v0 }
 0x8d0   :  { %3346 = vmatmul.mubr.msk.f32.vlgmr.msra.gmra.mrb[14].mxu1 %vm111_vm6, %v1066_v40  ;;  %3353 = vmatmul.mubr.msk.f32.vlgmr.msra.gmra.mrb[10].mxu0 %vm190_vm2, %v1237_v41 }
 0x8d1   :  { %3622 = vmatpush3.bf16.msra.mxu0 %v4184_v39  ;;  %3628 = vmatpush3.bf16.msra.mxu1 %v4186_v43 }
 0x8d2   :  { %3623 = vmatprep.subr.bf16.mxu0 %v3994_v0  ;;  %3363 = vmatprep.mubr.msk.f32.mxu0 %vm3995_vm0, %v3996_v1 }
 0x8d3   :  { %3629 = vmatprep.subr.bf16.mxu1 %v3994_v0  ;;  %3374 = vmatprep.mubr.msk.f32.mxu1 %vm3995_vm0, %v3996_v1 }
 0x8d5   :  { %3625 = vmatpush3.bf16.msra.mxu0 %v4189_v46  ;;  %3631 = vmatpush3.bf16.msra.mxu1 %v4193_v47 }
 0x8d6   :  { %3632 = vmatprep.subr.bf16.mxu0 %v3994_v0  ;;  %3638 = vmatprep.subr.bf16.mxu1 %v3994_v0 }
 0x99b   :  { %v1060_v35 = vpop.f32.mrb[12].mxu1 }
 0x99c   :  { %v3325_v42 = vpop.f32.mrb[13].mxu1 }
 0x99f   :  { %v1135_v44 = vpop.f32.mrb[8].mxu0 }
 0x9a0   :  { %v1136_v45 = vadd.f32 %v1135_v44, %v1060_v35  ;;  %v3336_v48 = vpop.f32.mrb[9].mxu0 }
 0x9a2   :  { %v1139_v49 = vadd.f32 %v4234_v56, %v1136_v45 }
 0x9a3   :  { %v1231_v50 = vpop.f32.mrb[14].mxu1  ;;  %v1306_v51 = vpop.f32.mrb[10].mxu0 }
 0x9a4   :  { %v3035_v52 = vmul.f32 -1.442695, %v1139_v49  ;;  %v3347_v53 = vpop.f32.mrb[15].mxu1  ;;  %v1307_v54 = vadd.f32 %v1306_v51, %v1231_v50  ;;  %v3354_v55 = vpop.f32.mrb[11].mxu0 }
 0x9a6   :  { %3774 = vpow2.f32 %v3035_v52  ;;  %v1310_v57 = vadd.f32 %v4170_v17, %v1307_v54 }
 0x9a8   :  { %v3038_v58 = vmul.f32 -1.442695, %v1310_v57 }
 0x9aa   :  { %3776 = vpow2.f32 %v3038_v58 }
 0x9ab   :  { %3778 = vtanh.f32 %v1139_v49 }
 0x9b0   :  { %v3775_v59 = vpop.eup %3774 }
 0x9b1   :  { %v1144_v60 = vadd.f32 1.0, %v3775_v59 }
 0x9b3   :  { %3780 = vrcp.f32 %v1144_v60 }
 0x9b4   :  { %v3777_v61 = vpop.eup %3776  ;;  %3782 = vtanh.f32 %v1310_v57 }
 0x9b5   :  { %v1315_v62 = vadd.f32 1.0, %v3777_v61  ;;  %v3779_v63 = vpop.eup %3778 }
 0x9b7   :  { %3784 = vrcp.f32 %v1315_v62 }
 0x9bd   :  { %v3781_v2 = vpop.eup %3780 }
 0x9be   :  { %v1147_v3 = vsel %vm4173_vm5, %v3779_v63, %v3781_v2  ;;  %v3783_v4 = vpop.eup %3782 }
 0x9bf   :  { %1150 = vrot.lane.b32.xlu0 %v1147_v3, %s3997_s24  ;;  %v1148_v16 = vmul.f32 %v1147_v3, %v4297_v24 }
 0x9c1   :  { %v3785_v6 = vpop.eup %3784 }
 0x9c2   :  { %v1318_v7 = vsel %vm4173_vm5, %v3783_v4, %v3785_v6 }
 0x9c3   :  { %1321 = vrot.lane.b32.xlu1 %v1318_v7, %s3997_s24  ;;  %v1319_v20 = vmul.f32 %v1318_v7, %v4301_v28 }
 0xa31   :  { %v1151_v8 = vpop.permute.xlu0 %1150 }
 0xa32   :  { %v1153_v13 = vmul.f32 %v1151_v8, %v1147_v3 }
 0xa34   :  { %1155 = vrot.lane.b32.xlu0 %v1153_v13, %s3998_s25 }
 0xa35   :  { %v1322_v14 = vpop.permute.xlu1 %1321 }
 0xa36   :  { %v1324_v15 = vmul.f32 %v1322_v14, %v1318_v7 }
 0xa38   :  { %1326 = vrot.lane.b32.xlu1 %v1324_v15, %s3998_s25 }
 0xaa6   :  { %v1156_v18 = vpop.permute.xlu0 %1155 }
 0xaa7   :  { %v4348_v19 = vadd.f32 %v1156_v18, %v1148_v16 }
 0xaa9   :  { %3786 = vtanh.f32 %v4348_v19 }
 0xaaa   :  { %v1327_v21 = vpop.permute.xlu1 %1326 }
 0xaab   :  { %v4352_v22 = vadd.f32 %v1327_v21, %v1319_v20 }
 0xaad   :  { %3788 = vtanh.f32 %v4352_v22 }
 0xab3   :  { %v3787_v23 = vpop.eup %3786 }
 0xab4   :  { %1161 = vrot.lane.b32.xlu0 %v3787_v23, %s3997_s24 }
 0xab7   :  { %v3789_v25 = vpop.eup %3788 }
 0xab8   :  { %1332 = vrot.lane.b32.xlu1 %v3789_v25, %s3997_s24 }
 0xb26   :  { %v1162_v26 = vpop.permute.xlu0 %1161 }
 0xb27   :  { %v1164_v24 = vmul.f32 %v1162_v26, %v1147_v3  ;;  %v1929_v26 = vrot.slane %v4146_v10, 5 }
 0xb29   :  { %1337 = vrot.lane.b32.xlu0 %v1164_v24, %s3998_s25  ;;  %v1930_v24 = vrot.slane %v4148_v11, 4 }
 0xb2a   :  { %v1333_v29 = vpop.permute.xlu1 %1332 }
 0xb2b   :  { %v1335_v31 = vmul.f32 %v1333_v29, %v1318_v7 }
 0xb2d   :  { %1412 = vrot.lane.b32.xlu1 %v1335_v31, %s3998_s25  ;;  %v1931_v31 = vsel %vm188_vm1, %v1930_v24, %v1929_v26 }
 0xb9b   :  { %v1338_v28 = vpop.permute.xlu0 %1337 }
 0xb9c   :  { %3364 = vmatmul.mubr.msk.f32.vlgmr.msra.gmra.mrb[12].mxu0 %vm111_vm6, %v1338_v28 }
 0xb9d   :  { %3634 = vmatpush3.bf16.msra.mxu0 %v4136_v5  ;;  %3385 = vmatprep.mubr.msk.f32.mxu0 %vm3995_vm0, %v3996_v1 }
 0xb9e   :  { %3635 = vmatprep.subr.bf16.mxu0 %v3994_v0 }
 0xb9f   :  { %v1413_v34 = vpop.permute.xlu1 %1412 }
 0xba0   :  { %3375 = vmatmul.mubr.msk.f32.vlgmr.msra.gmra.mrb[16].mxu1 %vm111_vm6, %v1413_v34 }
 0xba1   :  { %3637 = vmatpush3.bf16.msra.mxu0 %v4151_v12  ;;  %3640 = vmatpush3.bf16.msra.mxu1 %v4144_v9 }
 0xba2   :  { %3392 = vmatprep.mubr.msk.f32.mxu1 %vm3995_vm0, %v3996_v1  ;;  %3641 = vmatprep.subr.bf16.mxu1 %v3994_v0 }
 0xba3   :  { %3647 = vmatprep.subr.bf16.mxu0 %v3994_v0 }
 0xba4   :  { %3386 = vmatmul.mubr.msk.f32.vlgmr.msra.gmra.mrb[14].mxu0 %vm111_vm6, %v1413_v34  ;;  %3393 = vmatmul.mubr.msk.f32.vlgmr.msra.gmra.mrb[18].mxu1 %vm190_vm2, %v1584_v36 }
 0xba5   :  { %3643 = vmatpush3.bf16.msra.mxu1 %v4184_v39  ;;  %3649 = vmatpush3.bf16.msra.mxu0 %v4186_v43 }
 0xba6   :  { %3644 = vmatprep.subr.bf16.mxu1 %v3994_v0  ;;  %3403 = vmatprep.mubr.msk.f32.mxu1 %vm3995_vm0, %v3996_v1 }
 0xba7   :  { %3650 = vmatprep.subr.bf16.mxu0 %v3994_v0  ;;  %3414 = vmatprep.mubr.msk.f32.mxu0 %vm3995_vm0, %v3996_v1 }
 0xba9   :  { %3646 = vmatpush3.bf16.msra.mxu1 %v4189_v46  ;;  %3652 = vmatpush3.bf16.msra.mxu0 %v4193_v47 }
 0xbaa   :  { %3653 = vmatprep.subr.bf16.mxu1 %v3994_v0  ;;  %3659 = vmatprep.subr.bf16.mxu0 %v3994_v0 }
 0xc6f   :  { %v1407_v33 = vpop.f32.mrb[12].mxu0 }
 0xc70   :  { %v3365_v37 = vpop.f32.mrb[13].mxu0 }
 0xc73   :  { %v1482_v38 = vpop.f32.mrb[16].mxu1 }
 0xc74   :  { %v1483_v40 = vadd.f32 %v1482_v38, %v1407_v33  ;;  %v3376_v41 = vpop.f32.mrb[17].mxu1 }
 0xc76   :  { %v1486_v35 = vadd.f32 %v4234_v56, %v1483_v40 }
 0xc77   :  { %v1578_v42 = vpop.f32.mrb[14].mxu0  ;;  %v1653_v44 = vpop.f32.mrb[18].mxu1 }
 0xc78   :  { %v3041_v45 = vmul.f32 -1.442695, %v1486_v35  ;;  %v3387_v48 = vpop.f32.mrb[15].mxu0  ;;  %v1654_v49 = vadd.f32 %v1653_v44, %v1578_v42  ;;  %v3394_v50 = vpop.f32.mrb[19].mxu1 }
 0xc7a   :  { %3790 = vpow2.f32 %v3041_v45  ;;  %v1657_v51 = vadd.f32 %v4170_v17, %v1654_v49 }
 0xc7c   :  { %v3044_v52 = vmul.f32 -1.442695, %v1657_v51 }
 0xc7e   :  { %3792 = vpow2.f32 %v3044_v52 }
 0xc7f   :  { %3794 = vtanh.f32 %v1486_v35 }
 0xc84   :  { %v3791_v53 = vpop.eup %3790 }
 0xc85   :  { %v1491_v54 = vadd.f32 1.0, %v3791_v53 }
 0xc87   :  { %3796 = vrcp.f32 %v1491_v54 }
 0xc88   :  { %v3793_v55 = vpop.eup %3792  ;;  %3798 = vtanh.f32 %v1657_v51 }
 0xc89   :  { %v1662_v57 = vadd.f32 1.0, %v3793_v55  ;;  %v3795_v58 = vpop.eup %3794 }
 0xc8b   :  { %3800 = vrcp.f32 %v1662_v57 }
 0xc91   :  { %v3797_v59 = vpop.eup %3796 }
 0xc92   :  { %v1494_v60 = vsel %vm4173_vm5, %v3795_v58, %v3797_v59  ;;  %v3799_v61 = vpop.eup %3798 }
 0xc93   :  { %1497 = vrot.lane.b32.xlu0 %v1494_v60, %s3997_s24  ;;  %v1495_v7 = vmul.f32 %v1494_v60, %v4348_v19 }
 0xc95   :  { %v3801_v62 = vpop.eup %3800 }
 0xc96   :  { %v1665_v63 = vsel %vm4173_vm5, %v3799_v61, %v3801_v62 }
 0xc97   :  { %1668 = vrot.lane.b32.xlu1 %v1665_v63, %s3997_s24  ;;  %v1666_v14 = vmul.f32 %v1665_v63, %v4352_v22 }
 0xd05   :  { %v1498_v2 = vpop.permute.xlu0 %1497 }
 0xd06   :  { %v1500_v3 = vmul.f32 %v1498_v2, %v1494_v60 }
 0xd08   :  { %1502 = vrot.lane.b32.xlu0 %v1500_v3, %s3998_s25 }
 0xd09   :  { %v1669_v4 = vpop.permute.xlu1 %1668 }
 0xd0a   :  { %v1671_v6 = vmul.f32 %v1669_v4, %v1665_v63 }
 0xd0c   :  { %1673 = vrot.lane.b32.xlu1 %v1671_v6, %s3998_s25 }
 0xd7a   :  { %v1503_v8 = vpop.permute.xlu0 %1502 }
 0xd7b   :  { %v4399_v13 = vadd.f32 %v1503_v8, %v1495_v7 }
 0xd7d   :  { %3802 = vtanh.f32 %v4399_v13 }
 0xd7e   :  { %v1674_v15 = vpop.permute.xlu1 %1673 }
 0xd7f   :  { %v4403_v16 = vadd.f32 %v1674_v15, %v1666_v14 }
 0xd81   :  { %3804 = vtanh.f32 %v4403_v16 }
 0xd87   :  { %v3803_v18 = vpop.eup %3802 }
 0xd88   :  { %1508 = vrot.lane.b32.xlu0 %v3803_v18, %s3997_s24 }
 0xd8b   :  { %v3805_v20 = vpop.eup %3804 }
 0xd8c   :  { %1679 = vrot.lane.b32.xlu1 %v3805_v20, %s3997_s24 }
 0xdfa   :  { %v1509_v21 = vpop.permute.xlu0 %1508 }
 0xdfb   :  { %v1511_v19 = vmul.f32 %v1509_v21, %v1494_v60  ;;  %v2276_v21 = vrot.slane %v4146_v10, 6 }
 0xdfd   :  { %1684 = vrot.lane.b32.xlu0 %v1511_v19, %s3998_s25  ;;  %v2277_v19 = vrot.slane %v4148_v11, 5 }
 0xdfe   :  { %v1680_v23 = vpop.permute.xlu1 %1679 }
 0xdff   :  { %v1682_v25 = vmul.f32 %v1680_v23, %v1665_v63 }
 0xe01   :  { %1759 = vrot.lane.b32.xlu1 %v1682_v25, %s3998_s25  ;;  %v2278_v25 = vsel %vm188_vm1, %v2277_v19, %v2276_v21 }
 0xe6f   :  { %v1685_v22 = vpop.permute.xlu0 %1684 }
 0xe70   :  { %3404 = vmatmul.mubr.msk.f32.vlgmr.msra.gmra.mrb[20].mxu1 %vm111_vm6, %v1685_v22 }
 0xe71   :  { %3655 = vmatpush3.bf16.msra.mxu1 %v4136_v5  ;;  %3425 = vmatprep.mubr.msk.f32.mxu1 %vm3995_vm0, %v3996_v1 }
 0xe72   :  { %3656 = vmatprep.subr.bf16.mxu1 %v3994_v0 }
 0xe73   :  { %v1760_v29 = vpop.permute.xlu1 %1759 }
 0xe74   :  { %3415 = vmatmul.mubr.msk.f32.vlgmr.msra.gmra.mrb[16].mxu0 %vm111_vm6, %v1760_v29 }
 0xe75   :  { %3658 = vmatpush3.bf16.msra.mxu1 %v4151_v12  ;;  %3661 = vmatpush3.bf16.msra.mxu0 %v4144_v9 }
 0xe76   :  { %3432 = vmatprep.mubr.msk.f32.mxu0 %vm3995_vm0, %v3996_v1  ;;  %3662 = vmatprep.subr.bf16.mxu0 %v3994_v0 }
 0xe77   :  { %3668 = vmatprep.subr.bf16.mxu1 %v3994_v0 }
 0xe78   :  { %3426 = vmatmul.mubr.msk.f32.vlgmr.msra.gmra.mrb[22].mxu1 %vm111_vm6, %v1760_v29  ;;  %3433 = vmatmul.mubr.msk.f32.vlgmr.msra.gmra.mrb[18].mxu0 %vm190_vm2, %v1931_v31 }
 0xe79   :  { %3664 = vmatpush3.bf16.msra.mxu0 %v4184_v39  ;;  %3670 = vmatpush3.bf16.msra.mxu1 %v4186_v43 }
 0xe7a   :  { %3665 = vmatprep.subr.bf16.mxu0 %v3994_v0  ;;  %3443 = vmatprep.mubr.msk.f32.mxu0 %vm3995_vm0, %v3996_v1 }
 0xe7b   :  { %3671 = vmatprep.subr.bf16.mxu1 %v3994_v0  ;;  %3454 = vmatprep.mubr.msk.f32.mxu1 %vm3995_vm0, %v3996_v1 }
 0xe7d   :  { %3667 = vmatpush3.bf16.msra.mxu0 %v4189_v46  ;;  %3673 = vmatpush3.bf16.msra.mxu1 %v4193_v47 }
 0xe7e   :  { %3674 = vmatprep.subr.bf16.mxu0 %v3994_v0  ;;  %3680 = vmatprep.subr.bf16.mxu1 %v3994_v0 }
 0xf43   :  { %v1754_v28 = vpop.f32.mrb[20].mxu1 }
 0xf44   :  { %v3405_v32 = vpop.f32.mrb[21].mxu1 }
 0xf47   :  { %v1829_v30 = vpop.f32.mrb[16].mxu0 }
 0xf48   :  { %v1830_v34 = vadd.f32 %v1829_v30, %v1754_v28  ;;  %v3416_v36 = vpop.f32.mrb[17].mxu0 }
 0xf4a   :  { %v1833_v33 = vadd.f32 %v4234_v56, %v1830_v34 }
 0xf4b   :  { %v1925_v37 = vpop.f32.mrb[22].mxu1  ;;  %v2000_v38 = vpop.f32.mrb[18].mxu0 }
 0xf4c   :  { %v3047_v40 = vmul.f32 -1.442695, %v1833_v33  ;;  %v3427_v41 = vpop.f32.mrb[23].mxu1  ;;  %v2001_v35 = vadd.f32 %v2000_v38, %v1925_v37  ;;  %v3434_v42 = vpop.f32.mrb[19].mxu0 }
 0xf4e   :  { %3806 = vpow2.f32 %v3047_v40  ;;  %v2004_v44 = vadd.f32 %v4170_v17, %v2001_v35 }
 0xf50   :  { %v3050_v45 = vmul.f32 -1.442695, %v2004_v44 }
 0xf52   :  { %3808 = vpow2.f32 %v3050_v45 }
 0xf53   :  { %3810 = vtanh.f32 %v1833_v33 }
 0xf58   :  { %v3807_v48 = vpop.eup %3806 }
 0xf59   :  { %v1838_v49 = vadd.f32 1.0, %v3807_v48 }
 0xf5b   :  { %3812 = vrcp.f32 %v1838_v49 }
 0xf5c   :  { %v3809_v50 = vpop.eup %3808  ;;  %3814 = vtanh.f32 %v2004_v44 }
 0xf5d   :  { %v2009_v51 = vadd.f32 1.0, %v3809_v50  ;;  %v3811_v52 = vpop.eup %3810 }
 0xf5f   :  { %3816 = vrcp.f32 %v2009_v51 }
 0xf65   :  { %v3813_v53 = vpop.eup %3812 }
 0xf66   :  { %v1841_v54 = vsel %vm4173_vm5, %v3811_v52, %v3813_v53  ;;  %v3815_v55 = vpop.eup %3814 }
 0xf67   :  { %1844 = vrot.lane.b32.xlu0 %v1841_v54, %s3997_s24  ;;  %v1842_v63 = vmul.f32 %v1841_v54, %v4399_v13 }
 0xf69   :  { %v3817_v57 = vpop.eup %3816 }
 0xf6a   :  { %v2012_v58 = vsel %vm4173_vm5, %v3815_v55, %v3817_v57 }
 0xf6b   :  { %2015 = vrot.lane.b32.xlu1 %v2012_v58, %s3997_s24  ;;  %v2013_v4 = vmul.f32 %v2012_v58, %v4403_v16 }
 0xfd9   :  { %v1845_v59 = vpop.permute.xlu0 %1844 }
 0xfda   :  { %v1847_v60 = vmul.f32 %v1845_v59, %v1841_v54 }
 0xfdc   :  { %1849 = vrot.lane.b32.xlu0 %v1847_v60, %s3998_s25 }
 0xfdd   :  { %v2016_v61 = vpop.permute.xlu1 %2015 }
 0xfde   :  { %v2018_v62 = vmul.f32 %v2016_v61, %v2012_v58 }
 0xfe0   :  { %2020 = vrot.lane.b32.xlu1 %v2018_v62, %s3998_s25 }
0x104e   :  { %v1850_v2 = vpop.permute.xlu0 %1849 }
0x104f   :  { %v4450_v3 = vadd.f32 %v1850_v2, %v1842_v63 }
0x1051   :  { %3818 = vtanh.f32 %v4450_v3 }
0x1052   :  { %v2021_v6 = vpop.permute.xlu1 %2020 }
0x1053   :  { %v4454_v7 = vadd.f32 %v2021_v6, %v2013_v4 }
0x1055   :  { %3820 = vtanh.f32 %v4454_v7 }
0x105b   :  { %v3819_v8 = vpop.eup %3818 }
0x105c   :  { %1855 = vrot.lane.b32.xlu0 %v3819_v8, %s3997_s24 }
0x105f   :  { %v3821_v14 = vpop.eup %3820 }
0x1060   :  { %2026 = vrot.lane.b32.xlu1 %v3821_v14, %s3997_s24  ;;  %v3867_v14 = vld [vmem:[#allocation2 + $0x8] sm:$0xff] }
0x10ce   :  { %v1856_v15 = vpop.permute.xlu0 %1855 }
0x10cf   :  { %v1858_v13 = vmul.f32 %v1856_v15, %v1841_v54  ;;  %v2624_v15 = vrot.slane %v3867_v14, 6 }
0x10d1   :  { %2031 = vrot.lane.b32.xlu0 %v1858_v13, %s3998_s25 }
0x10d2   :  { %v2027_v18 = vpop.permute.xlu1 %2026 }
0x10d3   :  { %v2029_v20 = vmul.f32 %v2027_v18, %v2012_v58 }
0x10d5   :  { %2106 = vrot.lane.b32.xlu1 %v2029_v20, %s3998_s25 }
0x1143   :  { %v2032_v16 = vpop.permute.xlu0 %2031 }
0x1144   :  { %3444 = vmatmul.mubr.msk.f32.vlgmr.msra.gmra.mrb[20].mxu0 %vm111_vm6, %v2032_v16 }
0x1145   :  { %3676 = vmatpush3.bf16.msra.mxu0 %v4136_v5  ;;  %3465 = vmatprep.mubr.msk.f32.mxu0 %vm3995_vm0, %v3996_v1 }
0x1146   :  { %3677 = vmatprep.subr.bf16.mxu0 %v3994_v0 }
0x1147   :  { %v2107_v23 = vpop.permute.xlu1 %2106 }
0x1148   :  { %3455 = vmatmul.mubr.msk.f32.vlgmr.msra.gmra.mrb[24].mxu1 %vm111_vm6, %v2107_v23 }
0x1149   :  { %3679 = vmatpush3.bf16.msra.mxu0 %v4151_v12  ;;  %3682 = vmatpush3.bf16.msra.mxu1 %v4144_v9 }
0x114a   :  { %3472 = vmatprep.mubr.msk.f32.mxu1 %vm3995_vm0, %v3996_v1  ;;  %3683 = vmatprep.subr.bf16.mxu1 %v3994_v0 }
0x114b   :  { %3689 = vmatprep.subr.bf16.mxu0 %v3994_v0 }
0x114c   :  { %3466 = vmatmul.mubr.msk.f32.vlgmr.msra.gmra.mrb[22].mxu0 %vm111_vm6, %v2107_v23  ;;  %3473 = vmatmul.mubr.msk.f32.vlgmr.msra.gmra.mrb[26].mxu1 %vm190_vm2, %v2278_v25 }
0x114d   :  { %3685 = vmatpush3.bf16.msra.mxu1 %v4184_v39  ;;  %3691 = vmatpush3.bf16.msra.mxu0 %v4186_v43 }
0x114e   :  { %3686 = vmatprep.subr.bf16.mxu1 %v3994_v0  ;;  %3483 = vmatprep.mubr.msk.f32.mxu1 %vm3995_vm0, %v3996_v1 }
0x114f   :  { %3692 = vmatprep.subr.bf16.mxu0 %v3994_v0  ;;  %3494 = vmatprep.mubr.msk.f32.mxu0 %vm3995_vm0, %v3996_v1 }
0x1151   :  { %3688 = vmatpush3.bf16.msra.mxu1 %v4189_v46  ;;  %3694 = vmatpush3.bf16.msra.mxu0 %v4193_v47 }
0x1152   :  { %3695 = vmatprep.subr.bf16.mxu1 %v3994_v0  ;;  %3701 = vmatprep.subr.bf16.mxu0 %v3994_v0 }
0x1217   :  { %v2101_v10 = vpop.f32.mrb[20].mxu0 }
0x1218   :  { %v3445_v11 = vpop.f32.mrb[21].mxu0 }
0x121b   :  { %v2176_v22 = vpop.f32.mrb[24].mxu1 }
0x121c   :  { %v2177_v26 = vadd.f32 %v2176_v22, %v2101_v10  ;;  %v3456_v24 = vpop.f32.mrb[25].mxu1 }
0x121e   :  { %v2180_v29 = vadd.f32 %v4234_v56, %v2177_v26 }
0x121f   :  { %v2272_v31 = vpop.f32.mrb[22].mxu0  ;;  %v2347_v28 = vpop.f32.mrb[26].mxu1 }
0x1220   :  { %v3053_v32 = vmul.f32 -1.442695, %v2180_v29  ;;  %v3467_v30 = vpop.f32.mrb[23].mxu0  ;;  %v2348_v34 = vadd.f32 %v2347_v28, %v2272_v31  ;;  %v3474_v36 = vpop.f32.mrb[27].mxu1 }
0x1222   :  { %3822 = vpow2.f32 %v3053_v32  ;;  %v2351_v33 = vadd.f32 %v4170_v17, %v2348_v34 }
0x1224   :  { %v3056_v37 = vmul.f32 -1.442695, %v2351_v33 }
0x1226   :  { %3824 = vpow2.f32 %v3056_v37 }
0x1227   :  { %3826 = vtanh.f32 %v2180_v29 }
0x122c   :  { %v3823_v38 = vpop.eup %3822 }
0x122d   :  { %v2185_v40 = vadd.f32 1.0, %v3823_v38 }
0x122f   :  { %3828 = vrcp.f32 %v2185_v40 }
0x1230   :  { %v3825_v41 = vpop.eup %3824  ;;  %3830 = vtanh.f32 %v2351_v33 }
0x1231   :  { %v2356_v35 = vadd.f32 1.0, %v3825_v41  ;;  %v3827_v42 = vpop.eup %3826 }
0x1233   :  { %3832 = vrcp.f32 %v2356_v35 }
0x1239   :  { %v3829_v44 = vpop.eup %3828 }
0x123a   :  { %v2188_v45 = vsel %vm4173_vm5, %v3827_v42, %v3829_v44  ;;  %v3831_v48 = vpop.eup %3830 }
0x123b   :  { %2191 = vrot.lane.b32.xlu0 %v2188_v45, %s3997_s24  ;;  %v2189_v54 = vmul.f32 %v2188_v45, %v4450_v3 }
0x123d   :  { %v3833_v49 = vpop.eup %3832 }
0x123e   :  { %v2359_v17 = vsel %vm4173_vm5, %v3831_v48, %v3833_v49 }
0x123f   :  { %2362 = vrot.lane.b32.xlu1 %v2359_v17, %s3997_s24  ;;  %v2360_v58 = vmul.f32 %v2359_v17, %v4454_v7  ;;  %v3866_v7 = vld [vmem:[#allocation2] sm:$0xff] }
0x1240   :  { %v2623_v8 = vrot.slane %v3866_v7, 7 }
0x1242   :  { %v2625_v18 = vsel %vm188_vm1, %v2624_v15, %v2623_v8 }
0x12ad   :  { %v2192_v50 = vpop.permute.xlu0 %2191 }
0x12ae   :  { %v2194_v51 = vmul.f32 %v2192_v50, %v2188_v45 }
0x12b0   :  { %2196 = vrot.lane.b32.xlu0 %v2194_v51, %s3998_s25 }
0x12b1   :  { %v2363_v52 = vpop.permute.xlu1 %2362 }
0x12b2   :  { %v2365_v53 = vmul.f32 %v2363_v52, %v2359_v17 }
0x12b4   :  { %2367 = vrot.lane.b32.xlu1 %v2365_v53, %s3998_s25 }
0x1322   :  { %v2197_v55 = vpop.permute.xlu0 %2196 }
0x1323   :  { %v4501_v57 = vadd.f32 %v2197_v55, %v2189_v54 }
0x1325   :  { %3834 = vtanh.f32 %v4501_v57 }
0x1326   :  { %v2368_v59 = vpop.permute.xlu1 %2367 }
0x1327   :  { %v4505_v60 = vadd.f32 %v2368_v59, %v2360_v58 }
0x1329   :  { %3836 = vtanh.f32 %v4505_v60 }
0x132f   :  { %v3835_v61 = vpop.eup %3834 }
0x1330   :  { %2202 = vrot.lane.b32.xlu0 %v3835_v61, %s3997_s24  ;;  %v3869_v61 = vld [vmem:[%s4606_s6] ss:$0 sm:$0xff] }
0x1333   :  { %v3837_v62 = vpop.eup %3836 }
0x1334   :  { %2373 = vrot.lane.b32.xlu1 %v3837_v62, %s3997_s24 }
0x13a2   :  { %v2203_v63 = vpop.permute.xlu0 %2202 }
0x13a3   :  { %v2205_v2 = vmul.f32 %v2203_v63, %v2188_v45 }
0x13a5   :  { %2378 = vrot.lane.b32.xlu0 %v2205_v2, %s3998_s25 }
0x13a6   :  { %v2374_v3 = vpop.permute.xlu1 %2373 }
0x13a7   :  { %v2376_v4 = vmul.f32 %v2374_v3, %v2359_v17 }
0x13a9   :  { %2453 = vrot.lane.b32.xlu1 %v2376_v4, %s3998_s25 }
0x1417   :  { %v2379_v6 = vpop.permute.xlu0 %2378 }
0x1418   :  { %3484 = vmatmul.mubr.msk.f32.vlgmr.msra.gmra.mrb[28].mxu1 %vm111_vm6, %v2379_v6 }
0x1419   :  { %3697 = vmatpush3.bf16.msra.mxu1 %v4136_v5  ;;  %3505 = vmatprep.mubr.msk.f32.mxu1 %vm3995_vm0, %v3996_v1 }
0x141a   :  { %3698 = vmatprep.subr.bf16.mxu1 %v3994_v0 }
0x141b   :  { %v2454_v13 = vpop.permute.xlu1 %2453 }
0x141c   :  { %3495 = vmatmul.mubr.msk.f32.vlgmr.msra.gmra.mrb[24].mxu0 %vm111_vm6, %v2454_v13 }
0x141d   :  { %3700 = vmatpush3.bf16.msra.mxu1 %v4151_v12  ;;  %3703 = vmatpush3.bf16.msra.mxu0 %v4144_v9 }
0x141e   :  { %3512 = vmatprep.mubr.msk.f32.mxu0 %vm3995_vm0, %v3996_v1  ;;  %3704 = vmatprep.subr.bf16.mxu0 %v3994_v0 }
0x141f   :  { %3710 = vmatprep.subr.bf16.mxu1 %v3994_v0 }
0x1420   :  { %3506 = vmatmul.mubr.msk.f32.vlgmr.msra.gmra.mrb[30].mxu1 %vm111_vm6, %v2454_v13  ;;  %3513 = vmatmul.mubr.msk.f32.vlgmr.msra.gmra.mrb[26].mxu0 %vm190_vm2, %v2625_v18  ;;  %v2900_v18 = vld [vmem:[%s4607_s7] sm:$0xff] }
0x1421   :  { %3706 = vmatpush3.bf16.msra.mxu0 %v4184_v39  ;;  %3712 = vmatpush3.bf16.msra.mxu1 %v4186_v43 }
0x1422   :  { %3707 = vmatprep.subr.bf16.mxu0 %v3994_v0  ;;  %3523 = vmatprep.mubr.msk.f32.mxu0 %vm3995_vm0, %v3996_v1 }
0x1423   :  { %3713 = vmatprep.subr.bf16.mxu1 %v3994_v0  ;;  %3534 = vmatprep.mubr.msk.f32.mxu1 %vm3995_vm0, %v3996_v1 }
0x1425   :  { %3709 = vmatpush3.bf16.msra.mxu0 %v4189_v46  ;;  %3715 = vmatpush3.bf16.msra.mxu1 %v4193_v47  ;;  %v3868_v46 = vld [vmem:[%s4603_s3] ss:$0 sm:$0xff] }
0x1426   :  { %3716 = vmatprep.subr.bf16.mxu0 %v3994_v0 }
0x14eb   :  { %v2448_v5 = vpop.f32.mrb[28].mxu1 }
0x14ec   :  { %v3485_v9 = vpop.f32.mrb[29].mxu1 }
0x14ef   :  { %v2523_v12 = vpop.f32.mrb[24].mxu0 }
0x14f0   :  { %v2524_v39 = vadd.f32 %v2523_v12, %v2448_v5  ;;  %v3496_v43 = vpop.f32.mrb[25].mxu0  ;;  %v2901_v5 = vld [vmem:[%s4607_s7 + $0x8] sm:$0xff]  ;;  %v2903_v12 = vld [vmem:[%s4607_s7 + $0x18] sm:$0xff]  ;;  %s3999_s7 = smov [#allocation10]  }
0x14f1   :  { %v3717_v9 = vpack.c.bf16 %v2901_v5, %v2900_v18 }
0x14f2   :  { %v2527_v20 = vadd.f32 %v4234_v56, %v2524_v39  ;;  %v3720_v39 = vpack.c.bf16 %v2903_v12, %v2902_v27 }
0x14f3   :  { %v2619_v16 = vpop.f32.mrb[30].mxu1  ;;  %v2694_v21 = vpop.f32.mrb[26].mxu0 }
0x14f4   :  { %v3059_v19 = vmul.f32 -1.442695, %v2527_v20  ;;  %v3507_v23 = vpop.f32.mrb[31].mxu1  ;;  %v2695_v25 = vadd.f32 %v2694_v21, %v2619_v16  ;;  %v3514_v10 = vpop.f32.mrb[27].mxu0 }
0x14f6   :  { %3838 = vpow2.f32 %v3059_v19  ;;  %v2698_v47 = vadd.f32 %v3868_v46, %v2695_v25  ;;  %v3066_v19 = vld [vmem:[%s4608_s8] ss:$0 sm:$0xff]  ;;  %s3007_s8 = sshll.u32 %s3999_s7, 4  ;;  %s3008_s8 = int_to_ptr.vmem [resolvable:$true] %s3007_s8 }
0x14f7   :  { %s3958_s5 = scalar_lea.vmem %s3008_s8, 32  ;;  %p3963_p5 = scmp.lt.s32.totalorder %s3008_s8, %s3008_s8 }
0x14f8   :  { %v3062_v11 = vmul.f32 -1.442695, %v2698_v47  ;;  %p3959_p4 = scmp.ne.s32.totalorder %s3008_s8, %s3958_s5  ;;  %p3964_p6 = scmp.lt.s32.totalorder %s3958_s5, %s3958_s5 }
0x14fa   :  { %3840 = vpow2.f32 %v3062_v11  ;;  %p3965_p7 = por %p3964_p6, %p3963_p5 }
0x14fb   :  { %3842 = vtanh.f32 %v2527_v20 }
0x14fc   :  { %p3966_p8 = pnand %p3965_p7, %p3959_p4 }
0x1500   :  { %v3839_v22 = vpop.eup %3838 }
0x1501   :  { %v2532_v26 = vadd.f32 1.0, %v3839_v22 }
0x1503   :  { %3844 = vrcp.f32 %v2532_v26 }
0x1504   :  { %v3841_v24 = vpop.eup %3840  ;;  %3846 = vtanh.f32 %v2698_v47 }
0x1505   :  { %v2703_v56 = vadd.f32 1.0, %v3841_v24  ;;  %v3843_v29 = vpop.eup %3842 }
0x1507   :  { %3848 = vrcp.f32 %v2703_v56 }
0x150d   :  { %v3845_v31 = vpop.eup %3844 }
0x150e   :  { %v2535_v28 = vsel %vm4173_vm5, %v3843_v29, %v3845_v31  ;;  %v3847_v32 = vpop.eup %3846 }
0x150f   :  { %2538 = vrot.lane.b32.xlu0 %v2535_v28, %s3997_s24  ;;  %v2536_v40 = vmul.f32 %v2535_v28, %v4501_v57 }
0x1511   :  { %v3849_v30 = vpop.eup %3848 }
0x1512   :  { %v2706_v34 = vsel %vm4173_vm5, %v3847_v32, %v3849_v30 }
0x1513   :  { %2709 = vrot.lane.b32.xlu1 %v2706_v34, %s3997_s24  ;;  %v2707_v42 = vmul.f32 %v2706_v34, %v4505_v60 }
0x1581   :  { %v2539_v36 = vpop.permute.xlu0 %2538 }
0x1582   :  { %v2541_v33 = vmul.f32 %v2539_v36, %v2535_v28 }
0x1584   :  { %2543 = vrot.lane.b32.xlu0 %v2541_v33, %s3998_s25 }
0x1585   :  { %v2710_v37 = vpop.permute.xlu1 %2709 }
0x1586   :  { %v2712_v38 = vmul.f32 %v2710_v37, %v2706_v34 }
0x1588   :  { %2714 = vrot.lane.b32.xlu1 %v2712_v38, %s3998_s25 }
0x15f6   :  { %v2544_v41 = vpop.permute.xlu0 %2543 }
0x15f7   :  { %v2546_v35 = vadd.f32 %v2544_v41, %v2536_v40 }
0x15f9   :  { %3850 = vtanh.f32 %v2546_v35 }
0x15fa   :  { %v2715_v44 = vpop.permute.xlu1 %2714 }
0x15fb   :  { %v2717_v45 = vadd.f32 %v2715_v44, %v2707_v42 }
0x15fd   :  { %3852 = vtanh.f32 %v2717_v45 }
0x1603   :  { %v3851_v48 = vpop.eup %3850 }
0x1604   :  { %2549 = vrot.lane.b32.xlu0 %v3851_v48, %s3997_s24 }
0x1607   :  { %v3853_v49 = vpop.eup %3852 }
0x1608   :  { %2720 = vrot.lane.b32.xlu1 %v3853_v49, %s3997_s24 }
0x1676   :  { %v2550_v17 = vpop.permute.xlu0 %2549 }
0x1677   :  { %v2552_v50 = vmul.f32 %v2550_v17, %v2535_v28 }
0x1679   :  { %2725 = vrot.lane.b32.xlu0 %v2552_v50, %s3998_s25 }
0x167a   :  { %v2721_v51 = vpop.permute.xlu1 %2720 }
0x167b   :  { %v2723_v52 = vmul.f32 %v2721_v51, %v2706_v34 }
0x167d   :  { %2800 = vrot.lane.b32.xlu1 %v2723_v52, %s3998_s25 }
0x16eb   :  { %v2726_v53 = vpop.permute.xlu0 %2725 }
0x16ec   :  { %3524 = vmatmul.mubr.msk.f32.vlgmr.msra.gmra.mrb[28].mxu0 %vm111_vm6, %v2726_v53 }
0x16ed   :  { %3545 = vmatprep.mubr.msk.f32.mxu0 %vm3995_vm0, %v3996_v1  ;;  %3718 = vmatpush3.bf16.msra.mxu0 %v3717_v9 }
0x16ee   :  { %3719 = vmatprep.subr.bf16.mxu0 %v3994_v0 }
0x16ef   :  { %v2801_v54 = vpop.permute.xlu1 %2800 }
0x16f0   :  { %3535 = vmatmul.mubr.msk.f32.vlgmr.msra.gmra.mrb[32].mxu1 %vm111_vm6, %v2801_v54 }
0x16f1   :  { %3721 = vmatpush3.bf16.msra.mxu0 %v3720_v39 }
0x17bf   :  { %v2795_v55 = vpop.f32.mrb[28].mxu0 }
0x17c0   :  { %v3525_v57 = vpop.f32.mrb[29].mxu0 }
0x17c3   :  { %v2870_v58 = vpop.f32.mrb[32].mxu1 }
0x17c4   :  { %v2871_v59 = vadd.f32 %v2870_v58, %v2795_v55  ;;  %v3536_v60 = vpop.f32.mrb[33].mxu1 }
0x17c6   :  { %v2874_v62 = vadd.f32 %v3869_v61, %v2871_v59 }
0x17c8   :  { %v3065_v63 = vmul.f32 -1.442695, %v2874_v62 }
0x17ca   :  { %3854 = vpow2.f32 %v3065_v63 }
0x17cb   :  { %3856 = vtanh.f32 %v2874_v62 }
0x17d4   :  { %v3855_v2 = vpop.eup %3854 }
0x17d5   :  { %v2879_v3 = vadd.f32 1.0, %v3855_v2  ;;  %v3857_v1 = vpop.eup %3856 }
0x17d7   :  { %3858 = vrcp.f32 %v2879_v3 }
0x17e1   :  { %v3859_v4 = vpop.eup %3858 }
0x17e2   :  { %v2882_v6 = vsel %vm4173_vm5, %v3857_v1, %v3859_v4 }
0x17e3   :  { %2885 = vrot.lane.b32.xlu0 %v2882_v6, %s3997_s24  ;;  %v2883_v14 = vmul.f32 %v2882_v6, %v2546_v35 }
0x1855   :  { %v2886_v7 = vpop.permute.xlu0 %2885 }
0x1856   :  { %v2888_v8 = vmul.f32 %v2886_v7, %v2882_v6 }
0x1858   :  { %2890 = vrot.lane.b32.xlu1 %v2888_v8, %s3998_s25 }
0x18ca   :  { %v2891_v15 = vpop.permute.xlu1 %2890 }
0x18cb   :  { %v2893_v13 = vadd.f32 %v2891_v15, %v2883_v14 }
0x18cd   :  { %3860 = vtanh.f32 %v2893_v13 }
0x18d7   :  { %v3861_v43 = vpop.eup %3860 }
0x18d8   :  { %2896 = vrot.lane.b32.xlu0 %v3861_v43, %s3997_s24 }
0x194a   :  { %v2897_v20 = vpop.permute.xlu0 %2896 }
0x194b   :  { %v2899_v16 = vmul.f32 %v2897_v20, %v2882_v6 }
0x194d   :  { %2912 = vrot.lane.b32.xlu1 %v2899_v16, %s3998_s25 }
0x19bf   :  { %v2913_v21 = vpop.permute.xlu1 %2912 }
0x19c0   :  { %3546 = vmatmul.mubr.msk.f32.vlgmr.msra.gmra.mrb[30].mxu0 %vm111_vm6, %v2913_v21 }
0x1a93   :  { %v2982_v23 = vpop.f32.mrb[30].mxu0 }
0x1a94   :  { %v2983_v25 = vadd.f32 %v3066_v19, %v2982_v23  ;;  %v3547_v10 = vpop.f32.mrb[31].mxu0 }
0x1a96   :  { %v2986_v0 = vmul.f32 %v2983_v25, %v2983_v25 }
0x1a98   :  { %v2988_v46 = vsel %vm2987_vm7, %v2986_v0, 0.0 }
0x1a99   :  { %2989 = vadd.xlane.f32.xlu0 %v2988_v46 }
0x1b26   :  { %v2990_v47 = vpop.xlane.xlu0 %2989 }
0x1b27   :  { %3862 = vrsqrt.f32 %v2990_v47  ;;  %vm2993_vm8 = vcmp.eq.f32.partialorder %v2990_v47, inf  ;;  %v2996_v26 = vand.u32 2147483648, %v2990_v47  ;;  %vm2995_vm9 = vcmp.eq.f32.partialorder %v2990_v47, 0.0 }
0x1b31   :  { %v3863_v11 = vpop.eup %3862 }
0x1b32   :  { %v2992_v22 = vmul.f32 %v3863_v11, %v2990_v47 }
0x1b34   :  { %v2994_v24 = vsel %vm2993_vm8, %v2990_v47, %v2992_v22 }
0x1b35   :  { %v2997_v56 = vsel %vm2995_vm9, %v2996_v26, %v2994_v24 }
0x1b36   :  { %3864 = vrcp.f32 %v2997_v56 }
0x1b40   :  { %v3865_v29 = vpop.eup %3864 }
0x1b41   :  { %v2999_v31 = vmul.f32 %v3865_v29, %v2983_v25 }
0x1b43   :  { %3000 = vst.msk [vmem:[#allocation10] sm:$0x3] %vm2987_vm7, %v2999_v31 }
0x1b44   :  { %3969 = shalt.err (!%p3966_p8)
}
0x1b45   :  { %s3970_s16 = scalar_lea.hbm %s4609_s9, 32 }
0x1b46   :  { %p3971_p9 = scmp.ne.s32.totalorder %s4609_s9, %s3970_s16  ;;  %p3974_p10 = scmp.lt.u32.totalorder %s3970_s16, %s4609_s9 }
0x1b48   :  { %p3976_p11 = pnand %p3974_p10, %p3971_p9 }
0x1b4a   :  { %3979 = shalt.err (!%p3976_p11)
}
0x1b4b   :  { %3010 = dma.vmem_to_hbm [thread:$0]  %s3008_s8, 32, %s4609_s9, [#allocation4]  }
0x1b4c   :  { %3986 = dma.done.wait [#allocation4], 32  }
0x1b4d   :  { %3987 = vsyncadd [#allocation4], 4294967264 }
0x1b4e   :  { %3014 = vsyncpa [#allocation3], 1 }
0x1b4f   :  { %3015 = vsyncpa [#allocation6], 1 }
0x1b50   :  { %3016 = vsyncpa [#allocation9], 1 }
0x1b51   :  { %3017 = vsyncpa [#allocation4], 1 }

</bundles_post_ra>
